<compile_context>
chip_gen: v7x
topology: tpu7x:2x2x1
jax: 0.10.0
libtpu: 0.0.40
codegen_flags: <defaults>
</compile_context>

<pallas_src>
import jax
import jax.numpy as jnp
from jax import lax
from jax.experimental import pallas as pl
from jax.experimental.pallas import tpu as pltpu


# ----------------------------------------------------------------------------
# Kernel (one grid step == one batch element).
#   up_ref  : (H, W*Cin)                 conv_t input rows, lane = w*Cin+ci
#   cat_ref : (H+2, 2*2W*Ccat)           concat rows, lane = p*2W*Ccat+j*Ccat+c
#                                        (rows 0 and H+1 are zero halos)
#   a_ref   : (W*Cin, 2*2W*Cup)          conv_t weights, all 4 sub-pixel taps
#   pt_ref  : (2, 2*2W*Cup)              [bias; alpha] for conv_t QPReLU (tiled)
#   gc_ref  : (3, 2*2W*Ccat, 2*2W*Cout)  banded 3x3 weights, cat part, shifts -1/0/+1
#   gu_ref  : (3, 2*2W*Cup,  2*2W*Cout)  banded 3x3 weights, up part
#   pc_ref  : (2, 2*2W*Cout)             [bias; alpha] for conv QPReLU (tiled)
#   out_ref : (H, 2*2W*Cout)             lane = s_out*2W*Cout + j*Cout + o
#   u_scr   : (H+2, 2*2W*Cup)            VMEM scratch: padded up2 rows
# ----------------------------------------------------------------------------
def _upsample_block_kernel(up_ref, cat_ref, a_ref, pt_ref, gc_ref, gu_ref,
                           pc_ref, out_ref, u_scr):
    H = up_ref.shape[0]

    # Zero only the two halo rows (cheap), every step: correct regardless of
    # how the "parallel" grid axis is split across TensorCores.
    zero_row = jnp.zeros((1, u_scr.shape[1]), jnp.float32)
    u_scr[0:1, :] = zero_row
    u_scr[H + 1:H + 2, :] = zero_row

    # ---- stage 1: conv_t (all 4 sub-pixel taps in ONE dot) + bias + QPReLU
    y = jnp.dot(up_ref[...], a_ref[...], preferred_element_type=jnp.float32)
    y = y + pt_ref[0:1, :]
    y = jnp.maximum(y, 0.0) + pt_ref[1:2, :] * jnp.minimum(y, 0.0)
    u_scr[1:H + 1, :] = y                                   # interior rows

    # ---- stage 2: 3x3 conv as 6 banded matmuls (3 row shifts x {cat, up2}).
    # Column taps and output-row parity are baked into gc/gu, so each lhs is
    # just a row-shifted full-lane slab; bias is added once.
    acc = jnp.dot(cat_ref[0:H, :], gc_ref[0],
                  preferred_element_type=jnp.float32) + pc_ref[0:1, :]
    for q in (1, 2):
        acc = acc + jnp.dot(cat_ref[q:q + H, :], gc_ref[q],
                            preferred_element_type=jnp.float32)
    for q in (0, 1, 2):
        acc = acc + jnp.dot(u_scr[q:q + H, :], gu_ref[q],
                            preferred_element_type=jnp.float32)

    out_ref[...] = jnp.maximum(acc, 0.0) + pc_ref[1:2, :] * jnp.minimum(acc, 0.0)


# ----------------------------------------------------------------------------
# Host-side weight packing (runs once per traced call, all tiny).
# ----------------------------------------------------------------------------
def _build_conv_t_matrix(wt, W):
    """wt: (Cin, Cup, 2, 2) torch ConvTranspose2d weight [ci, co, s, t].
    Returns A (W*Cin, 2*2W*Cup) with
      A[w*Cin+ci, s*2W*Cup + j*Cup + co] = wt[ci, co, s, j-2w] for j-2w in {0,1}.
    """
    Cin, Cup = wt.shape[0], wt.shape[1]
    W2 = 2 * W
    t_mat = jnp.arange(W2)[None, :] - 2 * jnp.arange(W)[:, None]      # (W, W2)
    mask = (t_mat >= 0) & (t_mat <= 1)
    wt_s = jnp.transpose(wt, (2, 3, 0, 1))                            # [s, t, ci, co]
    sel = wt_s[:, jnp.clip(t_mat, 0, 1)]                              # (2, W, W2, Cin, Cup)
    sel = jnp.where(mask[None, :, :, None, None], sel, 0.0)
    # -> [w, ci, s, j, co]
    return jnp.transpose(sel, (1, 3, 0, 2, 4)).reshape(W * Cin, 2 * W2 * Cup)


def _build_band_matrices(wg, W):
    """wg: (Cout, Cg, 3, 3) one channel-group of the 3x3 conv (torch layout).
    Returns (3, 2*2W*Cg, 2*2W*Cout); index 0/1/2 <-> row shift -1/0/+1:
      G[q][p*2W*Cg + j_in*Cg + c, s*2W*Cout + j_out*Cout + o] = wg[o, c, dh, dw]
      with dh = 2*(q-1) + p + 1 - s in [0,3) and dw = j_in - j_out + 1 in [0,3).
    """
    Cout, Cg = wg.shape[0], wg.shape[1]
    W2 = 2 * W
    w_t = jnp.transpose(wg, (2, 3, 1, 0))                             # [dh, dw, c, o]
    dw = jnp.arange(W2)[:, None] - jnp.arange(W2)[None, :] + 1        # [j_in, j_out]
    mask_w = (dw >= 0) & (dw <= 2)
    mats = []
    for q in (-1, 0, 1):
        dh = 2 * q + jnp.arange(2)[:, None] + 1 - jnp.arange(2)[None, :]   # [p, s]
        mask_h = (dh >= 0) & (dh <= 2)
        sel = w_t[jnp.clip(dh, 0, 2)]                                  # (2,2,3,Cg,Cout)
        sel = sel[:, :, jnp.clip(dw, 0, 2)]                            # (2,2,W2,W2,Cg,Cout)
        m = (mask_h[:, :, None, None, None, None]
             & mask_w[None, None, :, :, None, None])
        g6 = jnp.where(m, sel, 0.0)                                    # [p,s,j_in,j_out,c,o]
        mats.append(jnp.transpose(g6, (0, 2, 4, 1, 3, 5))
                    .reshape(2 * W2 * Cg, 2 * W2 * Cout))
    return jnp.stack(mats, axis=0)


# ----------------------------------------------------------------------------
# UpsampleBlock forward (NCHW in / NCHW out, like the PyTorch module)
# ----------------------------------------------------------------------------
def upsample_block_forward(upsample_nchw, concat_nchw, params):
    N, Cin, H, W = upsample_nchw.shape
    _, Ccat, H2, W2 = concat_nchw.shape
    assert H2 == 2 * H and W2 == 2 * W
    wt = params["conv_t_w"]                          # (Cin, Cup, 2, 2)
    Cup = wt.shape[1]
    wc = params["conv_w"]                            # (Cout, Ccat+Cup, 3, 3)
    Cout = wc.shape[0]
    assert wc.shape[1] == Ccat + Cup

    # ---- layout plumbing (wrapper-side only; replaces the NCHW glue) -------
    up_row = jnp.transpose(upsample_nchw, (0, 2, 3, 1)).reshape(N, H, W * Cin)
    cat_row = (jnp.transpose(concat_nchw, (0, 2, 3, 1))      # (N, 2H, 2W, Ccat)
               .reshape(N, H, 2, W2, Ccat)                   # [n, h, p, j, c]
               .reshape(N, H, 2 * W2 * Ccat))
    cat_pad = jnp.pad(cat_row, ((0, 0), (1, 1), (0, 0)))     # zero row halos

    a_mat = _build_conv_t_matrix(wt, W)                      # (W*Cin, 2*2W*Cup)
    pt = jnp.stack([jnp.tile(params["conv_t_b"], 2 * W2),
                    jnp.tile(params["alpha_t"], 2 * W2)], axis=0)
    gc = _build_band_matrices(wc[:, :Ccat], W)               # (3, 2*2W*Ccat, 2*2W*Cout)
    gu = _build_band_matrices(wc[:, Ccat:], W)               # (3, 2*2W*Cup,  2*2W*Cout)
    pc = jnp.stack([jnp.tile(params["conv_b"], 2 * W2),
                    jnp.tile(params["alpha"], 2 * W2)], axis=0)

    lanes_cat = 2 * W2 * Ccat
    lanes_up = 2 * W2 * Cup
    lanes_out = 2 * W2 * Cout

    out2d = pl.pallas_call(
        _upsample_block_kernel,
        out_shape=jax.ShapeDtypeStruct((N, H, lanes_out), jnp.float32),
        grid_spec=pltpu.PrefetchScalarGridSpec(
            num_scalar_prefetch=0,
            grid=(N,),
            in_specs=[
                pl.BlockSpec((None, H, W * Cin), lambda n: (n, 0, 0)),
                pl.BlockSpec((None, H + 2, lanes_cat), lambda n: (n, 0, 0)),
                pl.BlockSpec((W * Cin, lanes_up), lambda n: (0, 0)),
                pl.BlockSpec((2, lanes_up), lambda n: (0, 0)),
                pl.BlockSpec((3, lanes_cat, lanes_out), lambda n: (0, 0, 0)),
                pl.BlockSpec((3, lanes_up, lanes_out), lambda n: (0, 0, 0)),
                pl.BlockSpec((2, lanes_out), lambda n: (0, 0)),
            ],
            out_specs=pl.BlockSpec((None, H, lanes_out), lambda n: (n, 0, 0)),
            scratch_shapes=[pltpu.VMEM((H + 2, lanes_up), jnp.float32)],
        ),
        compiler_params=pltpu.CompilerParams(
            dimension_semantics=("parallel",),
            vmem_limit_bytes=32 * 1024 * 1024,
        ),
    )(up_row, cat_pad, a_mat, pt, gc, gu, pc)

    # unpack (n, h, s*2W*Cout + j*Cout + o) -> NCHW
    out = out2d.reshape(N, H, 2, W2, Cout)
    return jnp.transpose(out, (0, 4, 1, 2, 3)).reshape(N, Cout, H2, W2)


# ----------------------------------------------------------------------------
# Pure-JAX reference for self-check
# ----------------------------------------------------------------------------
def _prelu(x, a):
    return jnp.maximum(x, 0.0) + a * jnp.minimum(x, 0.0)


def reference_forward(upsample_nchw, concat_nchw, params):
    up = jnp.transpose(upsample_nchw, (0, 2, 3, 1))
    cat = jnp.transpose(concat_nchw, (0, 2, 3, 1))
    Wt, bt, at = params["conv_t_w"], params["conv_t_b"], params["alpha_t"]
    N, H, W, Ci = up.shape
    Co = Wt.shape[1]
    out = jnp.zeros((N, 2 * H, 2 * W, Co), jnp.float32)
    for kh in range(2):
        for kw in range(2):
            v = jnp.einsum("nhwc,cd->nhwd", up, Wt[:, :, kh, kw])
            out = out.at[:, kh::2, kw::2, :].set(v)
    up2 = _prelu(out + bt, at)
    z = jnp.concatenate([cat, up2], axis=-1)
    Wc, bc, ac = params["conv_w"], params["conv_b"], params["alpha"]
    w_hwio = jnp.transpose(Wc, (2, 3, 1, 0))
    conv = lax.conv_general_dilated(
        z, w_hwio, window_strides=(1, 1), padding=((1, 1), (1, 1)),
        dimension_numbers=("NHWC", "HWIO", "NHWC"))
    out2 = _prelu(conv + bc, ac)
    return jnp.transpose(out2, (0, 3, 1, 2))


if __name__ == "__main__":
    key = jax.random.PRNGKey(0)
    in_ch, cat_ch, out_ch = 4, 4, 8
    N, H, W = 2, 8, 8                 # upsample branch; concat branch is (2H, 2W)
    ks = jax.random.split(key, 6)

    upsample = jax.random.normal(ks[0], (N, in_ch, H, W), jnp.float32)
    concat = jax.random.normal(ks[1], (N, cat_ch, 2 * H, 2 * W), jnp.float32)

    params = {
        "conv_t_w": 0.1 * jax.random.normal(ks[2], (in_ch, in_ch, 2, 2), jnp.float32),
        "conv_t_b": 0.1 * jax.random.normal(ks[3], (in_ch,), jnp.float32),
        "alpha_t": jnp.full((in_ch,), 0.25, jnp.float32),    # QPReLU init=0.25
        "conv_w": 0.1 * jax.random.normal(ks[4], (out_ch, in_ch + cat_ch, 3, 3), jnp.float32),
        "conv_b": 0.1 * jax.random.normal(ks[5], (out_ch,), jnp.float32),
        "alpha": jnp.full((out_ch,), 0.25, jnp.float32),     # QPReLU init=0.25
    }

    fwd = jax.jit(upsample_block_forward)
    out = jax.block_until_ready(fwd(upsample, concat, params))

    ref = reference_forward(upsample, concat, params)
    assert out.shape == (N, out_ch, 2 * H, 2 * W), out.shape
    assert jnp.allclose(out, ref, atol=1e-4, rtol=1e-4), float(jnp.abs(out - ref).max())
    print("KERNEL_OK")
</pallas_src>

<mosaic_0001>
module attributes {stable_mosaic.version = 11 : i64} {
  func.func @_upsample_block_kernel(%arg0: i32, %arg1: memref<1x8x32xf32, #tpu.memory_space<vmem>>, %arg2: memref<1x10x128xf32, #tpu.memory_space<vmem>>, %arg3: memref<32x128xf32, #tpu.memory_space<vmem>>, %arg4: memref<2x128xf32, #tpu.memory_space<vmem>>, %arg5: memref<3x128x256xf32, #tpu.memory_space<vmem>>, %arg6: memref<3x128x256xf32, #tpu.memory_space<vmem>>, %arg7: memref<2x256xf32, #tpu.memory_space<vmem>>, %arg8: memref<1x8x256xf32, #tpu.memory_space<vmem>>, %arg9: memref<10x128xf32, #tpu.memory_space<vmem>>) attributes {dimension_semantics = [#tpu.dimension_semantics<parallel>], iteration_bounds = array<i64: 2>, scalar_prefetch = 0 : i64, scratch_operands = 1 : i64, tpu.core_type = #tpu.core_type<tc>, window_params = [{transform_indices = @transform_0, window_bounds = array<i64: 1, 8, 32>}, {transform_indices = @transform_1, window_bounds = array<i64: 1, 10, 128>}, {pipeline_mode = #tpu.pipeline_mode<synchronous>, transform_indices = @transform_2, window_bounds = array<i64: 32, 128>}, {pipeline_mode = #tpu.pipeline_mode<synchronous>, transform_indices = @transform_3, window_bounds = array<i64: 2, 128>}, {pipeline_mode = #tpu.pipeline_mode<synchronous>, transform_indices = @transform_4, window_bounds = array<i64: 3, 128, 256>}, {pipeline_mode = #tpu.pipeline_mode<synchronous>, transform_indices = @transform_5, window_bounds = array<i64: 3, 128, 256>}, {pipeline_mode = #tpu.pipeline_mode<synchronous>, transform_indices = @transform_6, window_bounds = array<i64: 2, 256>}, {transform_indices = @transform_7, window_bounds = array<i64: 1, 8, 256>}]} {
    %cst = arith.constant 0.000000e+00 : f32
    %0 = vector.broadcast %cst : f32 to vector<1x128xf32>
    %c0 = arith.constant 0 : index
    %c0_0 = arith.constant 0 : index
    %1 = vector.load %arg9[%c0, %c0_0] : memref<10x128xf32, #tpu.memory_space<vmem>>, vector<1x128xf32>
    tpu.vector_store %arg9[%c0, %c0_0], %0 {strides = array<i32>} : memref<10x128xf32, #tpu.memory_space<vmem>>, vector<1x128xf32>,
    %c9 = arith.constant 9 : index
    %c0_1 = arith.constant 0 : index
    %2 = vector.load %arg9[%c9, %c0_1] : memref<10x128xf32, #tpu.memory_space<vmem>>, vector<1x128xf32>
    tpu.vector_store %arg9[%c9, %c0_1], %0 {strides = array<i32>} : memref<10x128xf32, #tpu.memory_space<vmem>>, vector<1x128xf32>,
    %c0_2 = arith.constant 0 : index
    %c0_3 = arith.constant 0 : index
    %c0_4 = arith.constant 0 : index
    %3 = vector.load %arg1[%c0_2, %c0_3, %c0_4] : memref<1x8x32xf32, #tpu.memory_space<vmem>>, vector<1x8x32xf32>
    %4 = vector.shape_cast %3 : vector<1x8x32xf32> to vector<8x32xf32>
    %c0_5 = arith.constant 0 : index
    %c0_6 = arith.constant 0 : index
    %5 = vector.load %arg3[%c0_5, %c0_6] : memref<32x128xf32, #tpu.memory_space<vmem>>, vector<32x128xf32>
    %cst_7 = arith.constant dense<0.000000e+00> : vector<8x128xf32>
    %6 = tpu.matmul %4, %5, %cst_7 {dimension_numbers = #tpu.dot_dimension_numbers<[1], [0], [0], [1], [0, 0, 1, 1], [], []>} : vector<8x32xf32>, vector<32x128xf32>, vector<8x128xf32> -> vector<8x128xf32>
    %c0_8 = arith.constant 0 : index
    %c0_9 = arith.constant 0 : index
    %7 = vector.load %arg4[%c0_8, %c0_9] : memref<2x128xf32, #tpu.memory_space<vmem>>, vector<1x128xf32>
    %8 = vector.broadcast %7 : vector<1x128xf32> to vector<8x128xf32>
    %9 = arith.addf %6, %8 : vector<8x128xf32>
    %cst_10 = arith.constant 0.000000e+00 : f32
    %10 = vector.broadcast %cst_10 : f32 to vector<8x128xf32>
    %11 = arith.maximumf %9, %10 : vector<8x128xf32>
    %c1 = arith.constant 1 : index
    %c0_11 = arith.constant 0 : index
    %12 = vector.load %arg4[%c1, %c0_11] : memref<2x128xf32, #tpu.memory_space<vmem>>, vector<1x128xf32>
    %cst_12 = arith.constant 0.000000e+00 : f32
    %13 = vector.broadcast %cst_12 : f32 to vector<8x128xf32>
    %14 = arith.minimumf %9, %13 : vector<8x128xf32>
    %15 = vector.broadcast %12 : vector<1x128xf32> to vector<8x128xf32>
    %16 = arith.mulf %15, %14 : vector<8x128xf32>
    %17 = arith.addf %11, %16 : vector<8x128xf32>
    %c1_13 = arith.constant 1 : index
    %c0_14 = arith.constant 0 : index
    %18 = vector.load %arg9[%c1_13, %c0_14] : memref<10x128xf32, #tpu.memory_space<vmem>>, vector<8x128xf32>
    tpu.vector_store %arg9[%c1_13, %c0_14], %17 {strides = array<i32>} : memref<10x128xf32, #tpu.memory_space<vmem>>, vector<8x128xf32>,
    %c0_15 = arith.constant 0 : index
    %c0_16 = arith.constant 0 : index
    %c0_17 = arith.constant 0 : index
    %19 = vector.load %arg2[%c0_15, %c0_16, %c0_17] : memref<1x10x128xf32, #tpu.memory_space<vmem>>, vector<1x8x128xf32>
    %20 = vector.shape_cast %19 : vector<1x8x128xf32> to vector<8x128xf32>
    %c0_18 = arith.constant 0 : index
    %c0_19 = arith.constant 0 : index
    %c0_20 = arith.constant 0 : index
    %21 = vector.load %arg5[%c0_18, %c0_19, %c0_20] : memref<3x128x256xf32, #tpu.memory_space<vmem>>, vector<1x128x256xf32>
    %22 = vector.shape_cast %21 : vector<1x128x256xf32> to vector<128x256xf32>
    %cst_21 = arith.constant dense<0.000000e+00> : vector<8x256xf32>
    %23 = tpu.matmul %20, %22, %cst_21 {dimension_numbers = #tpu.dot_dimension_numbers<[1], [0], [0], [1], [0, 0, 1, 1], [], []>} : vector<8x128xf32>, vector<128x256xf32>, vector<8x256xf32> -> vector<8x256xf32>
    %c0_22 = arith.constant 0 : index
    %c0_23 = arith.constant 0 : index
    %24 = vector.load %arg7[%c0_22, %c0_23] : memref<2x256xf32, #tpu.memory_space<vmem>>, vector<1x256xf32>
    %25 = vector.broadcast %24 : vector<1x256xf32> to vector<8x256xf32>
    %26 = arith.addf %23, %25 : vector<8x256xf32>
    %c0_24 = arith.constant 0 : index
    %c1_25 = arith.constant 1 : index
    %c0_26 = arith.constant 0 : index
    %27 = vector.load %arg2[%c0_24, %c1_25, %c0_26] : memref<1x10x128xf32, #tpu.memory_space<vmem>>, vector<1x8x128xf32>
    %28 = vector.shape_cast %27 : vector<1x8x128xf32> to vector<8x128xf32>
    %c1_27 = arith.constant 1 : index
    %c0_28 = arith.constant 0 : index
    %c0_29 = arith.constant 0 : index
    %29 = vector.load %arg5[%c1_27, %c0_28, %c0_29] : memref<3x128x256xf32, #tpu.memory_space<vmem>>, vector<1x128x256xf32>
    %30 = vector.shape_cast %29 : vector<1x128x256xf32> to vector<128x256xf32>
    %cst_30 = arith.constant dense<0.000000e+00> : vector<8x256xf32>
    %31 = tpu.matmul %28, %30, %cst_30 {dimension_numbers = #tpu.dot_dimension_numbers<[1], [0], [0], [1], [0, 0, 1, 1], [], []>} : vector<8x128xf32>, vector<128x256xf32>, vector<8x256xf32> -> vector<8x256xf32>
    %32 = arith.addf %26, %31 : vector<8x256xf32>
    %c0_31 = arith.constant 0 : index
    %c2 = arith.constant 2 : index
    %c0_32 = arith.constant 0 : index
    %33 = vector.load %arg2[%c0_31, %c2, %c0_32] : memref<1x10x128xf32, #tpu.memory_space<vmem>>, vector<1x8x128xf32>
    %34 = vector.shape_cast %33 : vector<1x8x128xf32> to vector<8x128xf32>
    %c2_33 = arith.constant 2 : index
    %c0_34 = arith.constant 0 : index
    %c0_35 = arith.constant 0 : index
    %35 = vector.load %arg5[%c2_33, %c0_34, %c0_35] : memref<3x128x256xf32, #tpu.memory_space<vmem>>, vector<1x128x256xf32>
    %36 = vector.shape_cast %35 : vector<1x128x256xf32> to vector<128x256xf32>
    %cst_36 = arith.constant dense<0.000000e+00> : vector<8x256xf32>
    %37 = tpu.matmul %34, %36, %cst_36 {dimension_numbers = #tpu.dot_dimension_numbers<[1], [0], [0], [1], [0, 0, 1, 1], [], []>} : vector<8x128xf32>, vector<128x256xf32>, vector<8x256xf32> -> vector<8x256xf32>
    %38 = arith.addf %32, %37 : vector<8x256xf32>
    %c0_37 = arith.constant 0 : index
    %c0_38 = arith.constant 0 : index
    %39 = vector.load %arg9[%c0_37, %c0_38] : memref<10x128xf32, #tpu.memory_space<vmem>>, vector<8x128xf32>
    %c0_39 = arith.constant 0 : index
    %c0_40 = arith.constant 0 : index
    %c0_41 = arith.constant 0 : index
    %40 = vector.load %arg6[%c0_39, %c0_40, %c0_41] : memref<3x128x256xf32, #tpu.memory_space<vmem>>, vector<1x128x256xf32>
    %41 = vector.shape_cast %40 : vector<1x128x256xf32> to vector<128x256xf32>
    %cst_42 = arith.constant dense<0.000000e+00> : vector<8x256xf32>
    %42 = tpu.matmul %39, %41, %cst_42 {dimension_numbers = #tpu.dot_dimension_numbers<[1], [0], [0], [1], [0, 0, 1, 1], [], []>} : vector<8x128xf32>, vector<128x256xf32>, vector<8x256xf32> -> vector<8x256xf32>
    %43 = arith.addf %38, %42 : vector<8x256xf32>
    %c1_43 = arith.constant 1 : index
    %c0_44 = arith.constant 0 : index
    %44 = vector.load %arg9[%c1_43, %c0_44] : memref<10x128xf32, #tpu.memory_space<vmem>>, vector<8x128xf32>
    %c1_45 = arith.constant 1 : index
    %c0_46 = arith.constant 0 : index
    %c0_47 = arith.constant 0 : index
    %45 = vector.load %arg6[%c1_45, %c0_46, %c0_47] : memref<3x128x256xf32, #tpu.memory_space<vmem>>, vector<1x128x256xf32>
    %46 = vector.shape_cast %45 : vector<1x128x256xf32> to vector<128x256xf32>
    %cst_48 = arith.constant dense<0.000000e+00> : vector<8x256xf32>
    %47 = tpu.matmul %44, %46, %cst_48 {dimension_numbers = #tpu.dot_dimension_numbers<[1], [0], [0], [1], [0, 0, 1, 1], [], []>} : vector<8x128xf32>, vector<128x256xf32>, vector<8x256xf32> -> vector<8x256xf32>
    %48 = arith.addf %43, %47 : vector<8x256xf32>
    %c2_49 = arith.constant 2 : index
    %c0_50 = arith.constant 0 : index
    %49 = vector.load %arg9[%c2_49, %c0_50] : memref<10x128xf32, #tpu.memory_space<vmem>>, vector<8x128xf32>
    %c2_51 = arith.constant 2 : index
    %c0_52 = arith.constant 0 : index
    %c0_53 = arith.constant 0 : index
    %50 = vector.load %arg6[%c2_51, %c0_52, %c0_53] : memref<3x128x256xf32, #tpu.memory_space<vmem>>, vector<1x128x256xf32>
    %51 = vector.shape_cast %50 : vector<1x128x256xf32> to vector<128x256xf32>
    %cst_54 = arith.constant dense<0.000000e+00> : vector<8x256xf32>
    %52 = tpu.matmul %49, %51, %cst_54 {dimension_numbers = #tpu.dot_dimension_numbers<[1], [0], [0], [1], [0, 0, 1, 1], [], []>} : vector<8x128xf32>, vector<128x256xf32>, vector<8x256xf32> -> vector<8x256xf32>
    %53 = arith.addf %48, %52 : vector<8x256xf32>
    %cst_55 = arith.constant 0.000000e+00 : f32
    %54 = vector.broadcast %cst_55 : f32 to vector<8x256xf32>
    %55 = arith.maximumf %53, %54 : vector<8x256xf32>
    %c1_56 = arith.constant 1 : index
    %c0_57 = arith.constant 0 : index
    %56 = vector.load %arg7[%c1_56, %c0_57] : memref<2x256xf32, #tpu.memory_space<vmem>>, vector<1x256xf32>
    %cst_58 = arith.constant 0.000000e+00 : f32
    %57 = vector.broadcast %cst_58 : f32 to vector<8x256xf32>
    %58 = arith.minimumf %53, %57 : vector<8x256xf32>
    %59 = vector.broadcast %56 : vector<1x256xf32> to vector<8x256xf32>
    %60 = arith.mulf %59, %58 : vector<8x256xf32>
    %61 = arith.addf %55, %60 : vector<8x256xf32>
    %c0_59 = arith.constant 0 : index
    %c0_60 = arith.constant 0 : index
    %c0_61 = arith.constant 0 : index
    %62 = vector.load %arg8[%c0_59, %c0_60, %c0_61] : memref<1x8x256xf32, #tpu.memory_space<vmem>>, vector<1x8x256xf32>
    %63 = vector.shape_cast %62 : vector<1x8x256xf32> to vector<8x256xf32>
    %64 = vector.shape_cast %61 : vector<8x256xf32> to vector<1x8x256xf32>
    tpu.vector_store %arg8[%c0_59, %c0_60, %c0_61], %64 {strides = array<i32>} : memref<1x8x256xf32, #tpu.memory_space<vmem>>, vector<1x8x256xf32>,
    return
  }
  func.func @transform_0(%arg0: i32) -> (i32, i32, i32) {
    %c0_i32 = arith.constant 0 : i32
    %c0_i32_0 = arith.constant 0 : i32
    %c0_i32_1 = arith.constant 0 : i32
    return %arg0, %c0_i32, %c0_i32_0 : i32, i32, i32
  }
  func.func @transform_1(%arg0: i32) -> (i32, i32, i32) {
    %c0_i32 = arith.constant 0 : i32
    %c0_i32_0 = arith.constant 0 : i32
    %c0_i32_1 = arith.constant 0 : i32
    return %arg0, %c0_i32, %c0_i32_0 : i32, i32, i32
  }
  func.func @transform_2(%arg0: i32) -> (i32, i32) {
    %c0_i32 = arith.constant 0 : i32
    %c0_i32_0 = arith.constant 0 : i32
    %c0_i32_1 = arith.constant 0 : i32
    return %c0_i32, %c0_i32_0 : i32, i32
  }
  func.func @transform_3(%arg0: i32) -> (i32, i32) {
    %c0_i32 = arith.constant 0 : i32
    %c0_i32_0 = arith.constant 0 : i32
    %c0_i32_1 = arith.constant 0 : i32
    return %c0_i32, %c0_i32_0 : i32, i32
  }
  func.func @transform_4(%arg0: i32) -> (i32, i32, i32) {
    %c0_i32 = arith.constant 0 : i32
    %c0_i32_0 = arith.constant 0 : i32
    %c0_i32_1 = arith.constant 0 : i32
    %c0_i32_2 = arith.constant 0 : i32
    return %c0_i32, %c0_i32_0, %c0_i32_1 : i32, i32, i32
  }
  func.func @transform_5(%arg0: i32) -> (i32, i32, i32) {
    %c0_i32 = arith.constant 0 : i32
    %c0_i32_0 = arith.constant 0 : i32
    %c0_i32_1 = arith.constant 0 : i32
    %c0_i32_2 = arith.constant 0 : i32
    return %c0_i32, %c0_i32_0, %c0_i32_1 : i32, i32, i32
  }
  func.func @transform_6(%arg0: i32) -> (i32, i32) {
    %c0_i32 = arith.constant 0 : i32
    %c0_i32_0 = arith.constant 0 : i32
    %c0_i32_1 = arith.constant 0 : i32
    return %c0_i32, %c0_i32_0 : i32, i32
  }
  func.func @transform_7(%arg0: i32) -> (i32, i32, i32) {
    %c0_i32 = arith.constant 0 : i32
    %c0_i32_0 = arith.constant 0 : i32
    %c0_i32_1 = arith.constant 0 : i32
    return %arg0, %c0_i32, %c0_i32_0 : i32, i32, i32
  }
}

</mosaic_0001>

<bundles_post_ra>
// kernel: tile.33
= control target key start
LH: loop header
LB: loop body
LE: loop exit
PB: predicated region body
PF: predicated region fallthrough
CT: control target
= control target key end

     0   :  { %s40_s0 = inlined_call_operand.vmem [shape: f32[8], index: 0, kind: input, shape index: {}]   ;;  %s41_s1 = inlined_call_operand.vmem [shape: f32[32,8], index: 1, kind: output, shape index: {}]  }
   0x1   :  { %v4_v0 = vld [vmem:[%s40_s0] ss:$0 sm:$0xff] }
   0x2   :  { %5 = vst [vmem:[%s41_s1] sm:$0xff] %v4_v0  ;;  %12 = vst [vmem:[%s41_s1 + $0x8] sm:$0xff] %v4_v0 }
   0x3   :  { %13 = vst [vmem:[%s41_s1 + $0x10] sm:$0xff] %v4_v0  ;;  %14 = vst [vmem:[%s41_s1 + $0x18] sm:$0xff] %v4_v0 }

// kernel: tile.38
= control target key start
LH: loop header
LB: loop body
LE: loop exit
PB: predicated region body
PF: predicated region fallthrough
CT: control target
= control target key end

     0   :  { %s7_s6 = smov 3  ;;  %s21_s9 = smov 3  ;;  %vm4_vm0 = vcmask 64512   ;;  %vm11_vm1 = vcmask 1048512   ;;  %vm18_vm2 = vcmask 982912   ;;  %vm25_vm3 = vcmask 917312   ;;  %s232_s0 = inlined_call_operand.vmem [shape: f32[32,8], index: 0, kind: input, shape index: {}]   ;;  %s233_s1 = inlined_call_operand.vmem [shape: f32[1,256], index: 1, kind: output, shape index: {}]  }
   0x1   :  { %v122_v0 = vld [vmem:[%s232_s0 + $0xf] ss:$16 sm:%s7_s6]   ;;  %s153_s10 = smov 120   ;;  %v124_v1 = vld [vmem:[%s232_s0 + $0xd] ss:$16 sm:%s21_s9]   ;;  %s14_s13 = smov 3 }
   0x2   :  { %9 = vrot.lane.b32.xlu0 %v122_v0, %s153_s10  ;;  %s154_s14 = smov 104   ;;  %v123_v2 = vld [vmem:[%s232_s0 + $0xe] ss:$16 sm:%s14_s13]   ;;  %s28_s17 = smov 3  ;;  %vm32_vm4 = vcmask 851712   ;;  %vm39_vm5 = vcmask 786112  }
   0x3   :  { %23 = vrot.lane.b32.xlu1 %v124_v1, %s154_s14  ;;  %v125_v3 = vld [vmem:[%s232_s0 + $0xc] ss:$16 sm:%s28_s17]   ;;  %s35_s20 = smov 3  ;;  %s42_s21 = smov 3  ;;  %vm46_vm6 = vcmask 720512   ;;  %vm53_vm7 = vcmask 654912  }
   0x4   :  { %s155_s22 = smov 112   ;;  %s156_s23 = smov 96   ;;  %v126_v4 = vld [vmem:[%s232_s0 + $0xb] ss:$16 sm:%s35_s20]   ;;  %v127_v5 = vld [vmem:[%s232_s0 + $0xa] ss:$16 sm:%s42_s21]  }
   0x5   :  { %s49_s28 = smov 3  ;;  %s56_s29 = smov 3  ;;  %vm60_vm8 = vcmask 589312   ;;  %vm67_vm9 = vcmask 523712   ;;  %vm74_vm10 = vcmask 458112   ;;  %vm81_vm11 = vcmask 392512  }
   0x6   :  { %16 = vrot.lane.b32.xlu0 %v123_v2, %s155_s22  ;;  %s157_s30 = smov 88   ;;  %s158_s2 = smov 80   ;;  %v128_v6 = vld [vmem:[%s232_s0 + $0x9] ss:$16 sm:%s49_s28]   ;;  %vm88_vm12 = vcmask 326912   ;;  %vm95_vm13 = vcmask 261312  }
   0x7   :  { %30 = vrot.lane.b32.xlu1 %v125_v3, %s156_s23  ;;  %v129_v7 = vld [vmem:[%s232_s0 + $0x8] ss:$16 sm:%s56_s29]   ;;  %s63_s7 = smov 3  ;;  %s70_s8 = smov 3  ;;  %vm102_vm14 = vcmask 195712   ;;  %vm109_vm15 = vcmask 130112  }
   0x8   :  { %s159_s9 = smov 72   ;;  %s160_s10 = smov 64   ;;  %v130_v8 = vld [vmem:[%s232_s0 + $0x7] ss:$16 sm:%s63_s7]   ;;  %v131_v9 = vld [vmem:[%s232_s0 + $0x6] ss:$16 sm:%s70_s8]  }
   0x9   :  { %s2_s13 = smov 3  ;;  %s77_s16 = smov 3 }
   0xa   :  { %37 = vrot.lane.b32.xlu0 %v126_v4, %s157_s30  ;;  %v3_v10 = vld [vmem:[%s232_s0] ss:$16 sm:%s2_s13]   ;;  %s84_s19 = smov 3  ;;  %s161_s20 = smov 56  }
   0xb   :  { %44 = vrot.lane.b32.xlu1 %v127_v5, %s158_s2  ;;  %5 = vst.msk [vmem:[#allocation0] ss:$8 sm:$0x3] %vm4_vm0, %v3_v10   ;;  %s162_s21 = smov 48   ;;  %v132_v11 = vld [vmem:[%s232_s0 + $0x5] ss:$16 sm:%s77_s16]  }
   0xc   :  { %v133_v12 = vld [vmem:[%s232_s0 + $0x4] ss:$16 sm:%s84_s19]   ;;  %s91_s26 = smov 3  ;;  %s98_s27 = smov 3 }
   0xd   :  { %s163_s28 = smov 40   ;;  %s164_s29 = smov 32   ;;  %v134_v13 = vld [vmem:[%s232_s0 + $0x3] ss:$16 sm:%s91_s26]   ;;  %v135_v14 = vld [vmem:[%s232_s0 + $0x2] ss:$16 sm:%s98_s27]  }
   0xe   :  { %51 = vrot.lane.b32.xlu0 %v128_v6, %s159_s9  ;;  %s105_s5 = smov 3  ;;  %s165_s6 = smov 24  }
   0xf   :  { %58 = vrot.lane.b32.xlu1 %v129_v7, %s160_s10  ;;  %s166_s7 = smov 16   ;;  %v136_v15 = vld [vmem:[%s232_s0 + $0x1] ss:$16 sm:%s105_s5]   ;;  %s167_s0 = smov 8  }
  0x12   :  { %65 = vrot.lane.b32.xlu0 %v130_v8, %s161_s20 }
  0x13   :  { %72 = vrot.lane.b32.xlu1 %v131_v9, %s162_s21 }
  0x16   :  { %79 = vrot.lane.b32.xlu0 %v132_v11, %s163_s28 }
  0x17   :  { %86 = vrot.lane.b32.xlu1 %v133_v12, %s164_s29 }
  0x1a   :  { %93 = vrot.lane.b32.xlu0 %v134_v13, %s165_s6 }
  0x1b   :  { %100 = vrot.lane.b32.xlu1 %v135_v14, %s166_s7 }
  0x1e   :  { %107 = vrot.lane.b32.xlu0 %v136_v15, %s167_s0 }
  0x74   :  { %v10_v16 = vpop.permute.xlu0 %9  }
  0x75   :  { %12 = vst.msk [vmem:[#allocation0] ss:$8 sm:$0x3] %vm11_vm1, %v10_v16   ;;  %v24_v17 = vpop.permute.xlu1 %23  }
  0x78   :  { %v17_v18 = vpop.permute.xlu0 %16  }
  0x79   :  { %19 = vst.msk [vmem:[#allocation0] ss:$8 sm:$0x3] %vm18_vm2, %v17_v18   ;;  %v31_v19 = vpop.permute.xlu1 %30  }
  0x7a   :  { %26 = vst.msk [vmem:[#allocation0] ss:$8 sm:$0x3] %vm25_vm3, %v24_v17  }
  0x7b   :  { %33 = vst.msk [vmem:[#allocation0] ss:$8 sm:$0x3] %vm32_vm4, %v31_v19  }
  0x7c   :  { %v38_v20 = vpop.permute.xlu0 %37  }
  0x7d   :  { %40 = vst.msk [vmem:[#allocation0] ss:$8 sm:$0x3] %vm39_vm5, %v38_v20   ;;  %v45_v21 = vpop.permute.xlu1 %44  }
  0x7e   :  { %47 = vst.msk [vmem:[#allocation0] ss:$8 sm:$0x3] %vm46_vm6, %v45_v21  }
  0x80   :  { %v52_v22 = vpop.permute.xlu0 %51  }
  0x81   :  { %54 = vst.msk [vmem:[#allocation0] ss:$8 sm:$0x3] %vm53_vm7, %v52_v22   ;;  %v59_v23 = vpop.permute.xlu1 %58  }
  0x82   :  { %61 = vst.msk [vmem:[#allocation0] ss:$8 sm:$0x3] %vm60_vm8, %v59_v23  }
  0x84   :  { %v66_v24 = vpop.permute.xlu0 %65  }
  0x85   :  { %68 = vst.msk [vmem:[#allocation0] ss:$8 sm:$0x3] %vm67_vm9, %v66_v24   ;;  %v73_v25 = vpop.permute.xlu1 %72  }
  0x86   :  { %75 = vst.msk [vmem:[#allocation0] ss:$8 sm:$0x3] %vm74_vm10, %v73_v25  }
  0x88   :  { %v80_v26 = vpop.permute.xlu0 %79  }
  0x89   :  { %82 = vst.msk [vmem:[#allocation0] ss:$8 sm:$0x3] %vm81_vm11, %v80_v26   ;;  %v87_v27 = vpop.permute.xlu1 %86  }
  0x8a   :  { %89 = vst.msk [vmem:[#allocation0] ss:$8 sm:$0x3] %vm88_vm12, %v87_v27  }
  0x8c   :  { %v94_v28 = vpop.permute.xlu0 %93  }
  0x8d   :  { %96 = vst.msk [vmem:[#allocation0] ss:$8 sm:$0x3] %vm95_vm13, %v94_v28   ;;  %v101_v29 = vpop.permute.xlu1 %100  }
  0x8e   :  { %103 = vst.msk [vmem:[#allocation0] ss:$8 sm:$0x3] %vm102_vm14, %v101_v29  }
  0x90   :  { %v108_v30 = vpop.permute.xlu0 %107  }
  0x91   :  { %110 = vst.msk [vmem:[#allocation0] ss:$8 sm:$0x3] %vm109_vm15, %v108_v30  }
  0x98   :  { %v114_v31 = vld [vmem:[#allocation0] sm:$0x1]  ;;  %v118_v32 = vld [vmem:[#allocation0 + $0x8] sm:$0x1] }
  0x99   :  { %116 = vst [vmem:[%s233_s1] sm:$0x1] %v114_v31  ;;  %137 = vst [vmem:[%s233_s1 + $0x1] sm:$0x1] %v118_v32 }

// kernel: tile.23
= control target key start
LH: loop header
LB: loop body
LE: loop exit
PB: predicated region body
PF: predicated region fallthrough
CT: control target
= control target key end

     0   :  { %s40_s0 = inlined_call_operand.vmem [shape: f32[4], index: 0, kind: input, shape index: {}]   ;;  %s41_s1 = inlined_call_operand.vmem [shape: f32[32,4], index: 1, kind: output, shape index: {}]  }
   0x1   :  { %v4_v0 = vld [vmem:[%s40_s0] ss:$0 sm:$0xff] }
   0x2   :  { %5 = vst [vmem:[%s41_s1] sm:$0xff] %v4_v0  ;;  %12 = vst [vmem:[%s41_s1 + $0x8] sm:$0xff] %v4_v0 }
   0x3   :  { %13 = vst [vmem:[%s41_s1 + $0x10] sm:$0xff] %v4_v0  ;;  %14 = vst [vmem:[%s41_s1 + $0x18] sm:$0xff] %v4_v0 }

// kernel: tile.28
= control target key start
LH: loop header
LB: loop body
LE: loop exit
PB: predicated region body
PF: predicated region fallthrough
CT: control target
= control target key end

     0   :  { %s259_s10 = smov 124   ;;  %s260_s11 = smov 116   ;;  %vm3_vm0 = vcmask 31744   ;;  %vm9_vm1 = vcmask 1048544   ;;  %vm15_vm2 = vcmask 1015744   ;;  %vm21_vm3 = vcmask 982944   ;;  %s399_s0 = inlined_call_operand.vmem [shape: f32[32,4], index: 0, kind: input, shape index: {}]   ;;  %s400_s1 = inlined_call_operand.vmem [shape: f32[1,128], index: 1, kind: output, shape index: {}]  }
   0x1   :  { %v197_v0 = vld [vmem:[%s399_s0 + $0x1f] sm:$0x1]   ;;  %v199_v1 = vld [vmem:[%s399_s0 + $0x1d] sm:$0x1]   ;;  %v198_v2 = vld [vmem:[%s399_s0 + $0x1e] sm:$0x1]  }
   0x2   :  { %7 = vrot.lane.b32.xlu0 %v197_v0, %s259_s10  ;;  %19 = vrot.lane.b32.xlu1 %v199_v1, %s260_s11  ;;  %v200_v3 = vld [vmem:[%s399_s0 + $0x1c] sm:$0x1]   ;;  %s261_s16 = smov 120   ;;  %s262_s17 = smov 112   ;;  %v201_v4 = vld [vmem:[%s399_s0 + $0x1b] sm:$0x1]  }
   0x3   :  { %v202_v5 = vld [vmem:[%s399_s0 + $0x1a] sm:$0x1]   ;;  %s263_s22 = smov 108   ;;  %s264_s23 = smov 104   ;;  %v203_v6 = vld [vmem:[%s399_s0 + $0x19] sm:$0x1]  }
   0x4   :  { %v204_v7 = vld [vmem:[%s399_s0 + $0x18] sm:$0x1]   ;;  %s265_s28 = smov 100   ;;  %s266_s29 = smov 96   ;;  %v205_v8 = vld [vmem:[%s399_s0 + $0x17] sm:$0x1]  }
   0x5   :  { %v206_v9 = vld [vmem:[%s399_s0 + $0x16] sm:$0x1]   ;;  %v2_v10 = vld [vmem:[%s399_s0] sm:$0x1]   ;;  %s267_s7 = smov 92   ;;  %s268_s8 = smov 88  }
   0x6   :  { %13 = vrot.lane.b32.xlu0 %v198_v2, %s261_s16  ;;  %25 = vrot.lane.b32.xlu1 %v200_v3, %s262_s17  ;;  %4 = vst.msk [vmem:[#allocation0] sm:$0x1] %vm3_vm0, %v2_v10   ;;  %v207_v11 = vld [vmem:[%s399_s0 + $0x15] sm:$0x1]   ;;  %v208_v12 = vld [vmem:[%s399_s0 + $0x14] sm:$0x1]  }
   0x7   :  { %s269_s13 = smov 84   ;;  %s270_s14 = smov 80   ;;  %v209_v13 = vld [vmem:[%s399_s0 + $0x13] sm:$0x1]   ;;  %v210_v14 = vld [vmem:[%s399_s0 + $0x12] sm:$0x1]  }
   0x8   :  { %s271_s19 = smov 76   ;;  %s272_s20 = smov 72   ;;  %v211_v15 = vld [vmem:[%s399_s0 + $0x11] sm:$0x1]   ;;  %v212_v16 = vld [vmem:[%s399_s0 + $0x10] sm:$0x1]  }
   0x9   :  { %s273_s25 = smov 68   ;;  %s274_s26 = smov 64   ;;  %v213_v17 = vld [vmem:[%s399_s0 + $0xf] sm:$0x1]   ;;  %v214_v18 = vld [vmem:[%s399_s0 + $0xe] sm:$0x1]  }
   0xa   :  { %31 = vrot.lane.b32.xlu0 %v201_v4, %s263_s22  ;;  %37 = vrot.lane.b32.xlu1 %v202_v5, %s264_s23  ;;  %s275_s2 = smov 60   ;;  %s276_s3 = smov 56   ;;  %v215_v19 = vld [vmem:[%s399_s0 + $0xd] sm:$0x1]   ;;  %v216_v20 = vld [vmem:[%s399_s0 + $0xc] sm:$0x1]  }
   0xb   :  { %s278_s9 = smov 48   ;;  %v217_v21 = vld [vmem:[%s399_s0 + $0xb] sm:$0x1]   ;;  %v218_v22 = vld [vmem:[%s399_s0 + $0xa] sm:$0x1]   ;;  %s280_s15 = smov 40  }
   0xc   :  { %v219_v23 = vld [vmem:[%s399_s0 + $0x9] sm:$0x1]   ;;  %v220_v24 = vld [vmem:[%s399_s0 + $0x8] sm:$0x1]   ;;  %s282_s21 = smov 32   ;;  %s284_s27 = smov 24  }
   0xd   :  { %v221_v25 = vld [vmem:[%s399_s0 + $0x7] sm:$0x1]   ;;  %v222_v26 = vld [vmem:[%s399_s0 + $0x6] sm:$0x1]   ;;  %v223_v27 = vld [vmem:[%s399_s0 + $0x5] sm:$0x1]  }
   0xe   :  { %43 = vrot.lane.b32.xlu0 %v203_v6, %s265_s28  ;;  %49 = vrot.lane.b32.xlu1 %v204_v7, %s266_s29  ;;  %v224_v28 = vld [vmem:[%s399_s0 + $0x4] sm:$0x1]   ;;  %s286_s4 = smov 16   ;;  %v225_v29 = vld [vmem:[%s399_s0 + $0x3] sm:$0x1]   ;;  %s288_s10 = smov 8  }
   0xf   :  { %v226_v30 = vld [vmem:[%s399_s0 + $0x2] sm:$0x1]   ;;  %v227_v31 = vld [vmem:[%s399_s0 + $0x1] sm:$0x1]   ;;  %s289_s0 = smov 4   ;;  %vm27_vm4 = vcmask 950144  }
  0x10   :  { %vm33_vm5 = vcmask 917344   ;;  %vm39_vm6 = vcmask 884544   ;;  %vm45_vm7 = vcmask 851744   ;;  %vm51_vm8 = vcmask 818944  }
  0x11   :  { %vm57_vm9 = vcmask 786144   ;;  %vm63_vm10 = vcmask 753344   ;;  %vm69_vm11 = vcmask 720544   ;;  %vm75_vm12 = vcmask 687744  }
  0x12   :  { %55 = vrot.lane.b32.xlu0 %v205_v8, %s267_s7  ;;  %61 = vrot.lane.b32.xlu1 %v206_v9, %s268_s8  ;;  %s277_s8 = smov 52   ;;  %vm81_vm13 = vcmask 654944   ;;  %vm87_vm14 = vcmask 622144   ;;  %vm93_vm15 = vcmask 589344   ;;  %vm99_vm0 = vcmask 556544  }
  0x16   :  { %67 = vrot.lane.b32.xlu0 %v207_v11, %s269_s13  ;;  %73 = vrot.lane.b32.xlu1 %v208_v12, %s270_s14  ;;  %s279_s14 = smov 44  }
  0x1a   :  { %79 = vrot.lane.b32.xlu0 %v209_v13, %s271_s19  ;;  %85 = vrot.lane.b32.xlu1 %v210_v14, %s272_s20  ;;  %s281_s20 = smov 36  }
  0x1e   :  { %91 = vrot.lane.b32.xlu0 %v211_v15, %s273_s25  ;;  %97 = vrot.lane.b32.xlu1 %v212_v16, %s274_s26  ;;  %s283_s26 = smov 28  }
  0x22   :  { %103 = vrot.lane.b32.xlu0 %v213_v17, %s275_s2  ;;  %109 = vrot.lane.b32.xlu1 %v214_v18, %s276_s3  ;;  %s285_s3 = smov 20  }
  0x26   :  { %115 = vrot.lane.b32.xlu0 %v215_v19, %s277_s8  ;;  %121 = vrot.lane.b32.xlu1 %v216_v20, %s278_s9  ;;  %s287_s9 = smov 12  }
  0x2a   :  { %127 = vrot.lane.b32.xlu0 %v217_v21, %s279_s14  ;;  %133 = vrot.lane.b32.xlu1 %v218_v22, %s280_s15 }
  0x2e   :  { %139 = vrot.lane.b32.xlu0 %v219_v23, %s281_s20  ;;  %145 = vrot.lane.b32.xlu1 %v220_v24, %s282_s21 }
  0x32   :  { %151 = vrot.lane.b32.xlu0 %v221_v25, %s283_s26  ;;  %157 = vrot.lane.b32.xlu1 %v222_v26, %s284_s27 }
  0x36   :  { %163 = vrot.lane.b32.xlu0 %v223_v27, %s285_s3  ;;  %169 = vrot.lane.b32.xlu1 %v224_v28, %s286_s4 }
  0x3a   :  { %175 = vrot.lane.b32.xlu0 %v225_v29, %s287_s9  ;;  %181 = vrot.lane.b32.xlu1 %v226_v30, %s288_s10 }
  0x3e   :  { %187 = vrot.lane.b32.xlu0 %v227_v31, %s289_s0 }
  0x74   :  { %v8_v32 = vpop.permute.xlu0 %7   ;;  %v20_v33 = vpop.permute.xlu1 %19  }
  0x75   :  { %10 = vst.msk [vmem:[#allocation0] sm:$0x1] %vm9_vm1, %v8_v32   ;;  %vm105_vm1 = vcmask 523744  }
  0x78   :  { %v14_v34 = vpop.permute.xlu0 %13   ;;  %v26_v35 = vpop.permute.xlu1 %25  }
  0x79   :  { %16 = vst.msk [vmem:[#allocation0] sm:$0x1] %vm15_vm2, %v14_v34   ;;  %vm111_vm2 = vcmask 490944  }
  0x7a   :  { %22 = vst.msk [vmem:[#allocation0] sm:$0x1] %vm21_vm3, %v20_v33   ;;  %vm117_vm3 = vcmask 458144  }
  0x7b   :  { %28 = vst.msk [vmem:[#allocation0] sm:$0x1] %vm27_vm4, %v26_v35   ;;  %vm123_vm4 = vcmask 425344  }
  0x7c   :  { %v32_v36 = vpop.permute.xlu0 %31   ;;  %v38_v37 = vpop.permute.xlu1 %37  }
  0x7d   :  { %34 = vst.msk [vmem:[#allocation0] sm:$0x1] %vm33_vm5, %v32_v36   ;;  %vm129_vm5 = vcmask 392544  }
  0x7e   :  { %40 = vst.msk [vmem:[#allocation0] sm:$0x1] %vm39_vm6, %v38_v37   ;;  %vm135_vm6 = vcmask 359744  }
  0x80   :  { %v44_v38 = vpop.permute.xlu0 %43   ;;  %v50_v39 = vpop.permute.xlu1 %49  }
  0x81   :  { %46 = vst.msk [vmem:[#allocation0] sm:$0x1] %vm45_vm7, %v44_v38   ;;  %vm141_vm7 = vcmask 326944  }
  0x82   :  { %52 = vst.msk [vmem:[#allocation0] sm:$0x1] %vm51_vm8, %v50_v39   ;;  %vm147_vm8 = vcmask 294144  }
  0x84   :  { %v56_v40 = vpop.permute.xlu0 %55   ;;  %v62_v41 = vpop.permute.xlu1 %61  }
  0x85   :  { %58 = vst.msk [vmem:[#allocation0] sm:$0x1] %vm57_vm9, %v56_v40   ;;  %vm153_vm9 = vcmask 261344  }
  0x86   :  { %64 = vst.msk [vmem:[#allocation0] sm:$0x1] %vm63_vm10, %v62_v41   ;;  %vm159_vm10 = vcmask 228544  }
  0x88   :  { %v68_v42 = vpop.permute.xlu0 %67   ;;  %v74_v43 = vpop.permute.xlu1 %73  }
  0x89   :  { %70 = vst.msk [vmem:[#allocation0] sm:$0x1] %vm69_vm11, %v68_v42   ;;  %vm165_vm11 = vcmask 195744  }
  0x8a   :  { %76 = vst.msk [vmem:[#allocation0] sm:$0x1] %vm75_vm12, %v74_v43   ;;  %vm171_vm12 = vcmask 162944  }
  0x8c   :  { %v80_v44 = vpop.permute.xlu0 %79   ;;  %v86_v45 = vpop.permute.xlu1 %85  }
  0x8d   :  { %82 = vst.msk [vmem:[#allocation0] sm:$0x1] %vm81_vm13, %v80_v44   ;;  %vm177_vm13 = vcmask 130144  }
  0x8e   :  { %88 = vst.msk [vmem:[#allocation0] sm:$0x1] %vm87_vm14, %v86_v45   ;;  %vm183_vm14 = vcmask 97344  }
  0x90   :  { %v92_v46 = vpop.permute.xlu0 %91   ;;  %v98_v47 = vpop.permute.xlu1 %97  }
  0x91   :  { %94 = vst.msk [vmem:[#allocation0] sm:$0x1] %vm93_vm15, %v92_v46   ;;  %vm189_vm15 = vcmask 64544  }
  0x92   :  { %100 = vst.msk [vmem:[#allocation0] sm:$0x1] %vm99_vm0, %v98_v47  }
  0x94   :  { %v104_v48 = vpop.permute.xlu0 %103   ;;  %v110_v49 = vpop.permute.xlu1 %109  }
  0x95   :  { %106 = vst.msk [vmem:[#allocation0] sm:$0x1] %vm105_vm1, %v104_v48  }
  0x96   :  { %112 = vst.msk [vmem:[#allocation0] sm:$0x1] %vm111_vm2, %v110_v49  }
  0x98   :  { %v116_v50 = vpop.permute.xlu0 %115   ;;  %v122_v51 = vpop.permute.xlu1 %121  }
  0x99   :  { %118 = vst.msk [vmem:[#allocation0] sm:$0x1] %vm117_vm3, %v116_v50  }
  0x9a   :  { %124 = vst.msk [vmem:[#allocation0] sm:$0x1] %vm123_vm4, %v122_v51  }
  0x9c   :  { %v128_v52 = vpop.permute.xlu0 %127   ;;  %v134_v53 = vpop.permute.xlu1 %133  }
  0x9d   :  { %130 = vst.msk [vmem:[#allocation0] sm:$0x1] %vm129_vm5, %v128_v52  }
  0x9e   :  { %136 = vst.msk [vmem:[#allocation0] sm:$0x1] %vm135_vm6, %v134_v53  }
  0xa0   :  { %v140_v54 = vpop.permute.xlu0 %139   ;;  %v146_v55 = vpop.permute.xlu1 %145  }
  0xa1   :  { %142 = vst.msk [vmem:[#allocation0] sm:$0x1] %vm141_vm7, %v140_v54  }
  0xa2   :  { %148 = vst.msk [vmem:[#allocation0] sm:$0x1] %vm147_vm8, %v146_v55  }
  0xa4   :  { %v152_v56 = vpop.permute.xlu0 %151   ;;  %v158_v57 = vpop.permute.xlu1 %157  }
  0xa5   :  { %154 = vst.msk [vmem:[#allocation0] sm:$0x1] %vm153_vm9, %v152_v56  }
  0xa6   :  { %160 = vst.msk [vmem:[#allocation0] sm:$0x1] %vm159_vm10, %v158_v57  }
  0xa8   :  { %v164_v58 = vpop.permute.xlu0 %163   ;;  %v170_v59 = vpop.permute.xlu1 %169  }
  0xa9   :  { %166 = vst.msk [vmem:[#allocation0] sm:$0x1] %vm165_vm11, %v164_v58  }
  0xaa   :  { %172 = vst.msk [vmem:[#allocation0] sm:$0x1] %vm171_vm12, %v170_v59  }
  0xac   :  { %v176_v60 = vpop.permute.xlu0 %175   ;;  %v182_v61 = vpop.permute.xlu1 %181  }
  0xad   :  { %178 = vst.msk [vmem:[#allocation0] sm:$0x1] %vm177_vm13, %v176_v60  }
  0xae   :  { %184 = vst.msk [vmem:[#allocation0] sm:$0x1] %vm183_vm14, %v182_v61  }
  0xb0   :  { %v188_v62 = vpop.permute.xlu0 %187  }
  0xb1   :  { %190 = vst.msk [vmem:[#allocation0] sm:$0x1] %vm189_vm15, %v188_v62  }
  0xb8   :  { %v194_v63 = vld [vmem:[#allocation0] sm:$0x1] }
  0xb9   :  { %196 = vst [vmem:[%s400_s1] sm:$0x1] %v194_v63 }

// kernel: upsample_block_forward.1
= control target key start
LH: loop header
LB: loop body
LE: loop exit
PB: predicated region body
PF: predicated region fallthrough
CT: control target
= control target key end

     0   :  { %s1566_s24 = smov 0   ;;  %s2212_s0 = inlined_call_operand.vmem [shape: f32[2,8,32], index: 0, kind: input, shape index: {}]   ;;  %s2213_s1 = inlined_call_operand.vmem [shape: f32[2,10,128], index: 1, kind: input, shape index: {}]   ;;  %s2214_s2 = inlined_call_operand.vmem [shape: f32[32,128], index: 2, kind: input, shape index: {}]   ;;  %s2215_s3 = inlined_call_operand.vmem [shape: f32[2,128], index: 3, kind: input, shape index: {}]   ;;  %s2216_s4 = inlined_call_operand.vmem [shape: f32[3,128,256], index: 4, kind: input, shape index: {}]   ;;  %s2217_s5 = inlined_call_operand.vmem [shape: f32[3,128,256], index: 5, kind: input, shape index: {}]   ;;  %s2218_s6 = inlined_call_operand.vmem [shape: f32[2,256], index: 6, kind: input, shape index: {}]   ;;  %s2219_s7 = inlined_call_operand.vmem [shape: f32[2,8,256], index: 7, kind: output, shape index: {}]  }
   0x1 LB: > { %s1132_s25 = sadd.s32 4294967295, %s1521_s24   ;;  %p1136_p0 = scmp.ge.s32.totalorder %s1521_s24, 1  ;;  %s1521_s24 = sphi %s1566_s24, %s17_s24  }
   0x2   : > { %p246_p1 = scmp.lt.s32.totalorder %s1521_s24, 3 }
   0x4   : > { %p247_p2 = pnand %p1136_p0, %p246_p1 }
   0x5   : > { %v299_v0 = vld [vmem:[%s2214_s2] sm:$0xff] (!%p247_p2)  ;;  %v300_v1 = vld [vmem:[%s2214_s2 + $0x8] sm:$0xff] (!%p247_p2)  ;;  %v301_v2 = vld [vmem:[%s2214_s2 + $0x10] sm:$0xff] (!%p247_p2)  ;;  %v1523_v3 = vmov (!%p247_p2), 0.0|0.0   ;;  %vm1524_vm0 = vmmov (!%p247_p2), 0   ;;  %v1525_v6 = vmov (!%p247_p2), 0.0  }
   0x6   : > { %250 = sbr.rel (%p247_p2) target bundleno = 531 (0x213), region = 48  ;;  %1294 = vmatprep.subr.bf16.mxu0 (!%p247_p2), %v1523_v3  ;;  %v1295_v4 = vpack.c.bf16 (!%p247_p2), %v300_v1, %v299_v0  ;;  %v302_v5 = vld [vmem:[%s2214_s2 + $0x18] sm:$0xff] (!%p247_p2)  ;;  %1291 = vmatprep.mubr.msk.f32.mxu0 (!%p247_p2), %vm1524_vm0, %v1525_v6  ;;  %296 = vst [vmem:[#allocation2] sm:$0x1] (!%p247_p2), %v1525_v6  ;;  %297 = vst [vmem:[#allocation2 + $0x9] sm:$0x1] (!%p247_p2), %v1525_v6 }
   0x7   : > { %p282_p3 = scmp.lt.s32.totalorder (!%p247_p2), %s1132_s25, 1  ;;  %v394_v7 = vld [vmem:[%s2216_s4 + $0x8] sm:$0xff] (!%p247_p2)  ;;  %v396_v8 = vld [vmem:[%s2216_s4 + $0x18] sm:$0xff] (!%p247_p2)  ;;  %819 = vmatprep.mubr.f32.mxu1 (!%p247_p2), %v1525_v6  ;;  %v1298_v9 = vpack.c.bf16 (!%p247_p2), %v302_v5, %v301_v2  ;;  %v393_v11 = vld [vmem:[%s2216_s4] sm:$0xff] (!%p247_p2)  ;;  %vm308_vm1 = vcmask (!%p247_p2), 261120  }
   0x8   : > { %1296 = vmatpush3.bf16.msra.mxu0 (!%p247_p2), %v1295_v4  ;;  %v1300_v10 = vpack.c.bf16 (!%p247_p2), %v396_v8, %v394_v7  ;;  %v395_v12 = vld [vmem:[%s2216_s4 + $0x10] sm:$0xff] (!%p247_p2)  ;;  %v398_v13 = vld [vmem:[%s2216_s4 + $0x28] sm:$0xff] (!%p247_p2)  ;;  %v400_v14 = vld [vmem:[%s2216_s4 + $0x38] sm:$0xff] (!%p247_p2) }
   0x9   : > { %1297 = vmatprep.subr.bf16.mxu0 (!%p247_p2), %v1523_v3  ;;  %v1302_v16 = vpack.c.bf16 (!%p247_p2), %v395_v12, %v393_v11  ;;  %v1304_v17 = vpack.c.bf16 (!%p247_p2), %v400_v14, %v398_v13  ;;  %v397_v18 = vld [vmem:[%s2216_s4 + $0x20] sm:$0xff] (!%p247_p2)  ;;  %v399_v19 = vld [vmem:[%s2216_s4 + $0x30] sm:$0xff] (!%p247_p2)  ;;  %v402_v20 = vld [vmem:[%s2216_s4 + $0x48] sm:$0xff] (!%p247_p2) }
   0xa   : > { %v404_v21 = vld [vmem:[%s2216_s4 + $0x58] sm:$0xff] (!%p247_p2)  ;;  %v1306_v22 = vpack.c.bf16 (!%p247_p2), %v399_v19, %v397_v18  ;;  %v401_v24 = vld [vmem:[%s2216_s4 + $0x40] sm:$0xff] (!%p247_p2)  ;;  %v403_v25 = vld [vmem:[%s2216_s4 + $0x50] sm:$0xff] (!%p247_p2) }
   0xb   : > { %v1308_v23 = vpack.c.bf16 (!%p247_p2), %v404_v21, %v402_v20  ;;  %v406_v26 = vld [vmem:[%s2216_s4 + $0x68] sm:$0xff] (!%p247_p2)  ;;  %v408_v27 = vld [vmem:[%s2216_s4 + $0x78] sm:$0xff] (!%p247_p2)  ;;  %v1310_v28 = vpack.c.bf16 (!%p247_p2), %v403_v25, %v401_v24  ;;  %v405_v30 = vld [vmem:[%s2216_s4 + $0x60] sm:$0xff] (!%p247_p2) }
   0xc   : > { %1299 = vmatpush3.bf16.msra.mxu0 (!%p247_p2), %v1298_v9  ;;  %v1312_v29 = vpack.c.bf16 (!%p247_p2), %v408_v27, %v406_v26  ;;  %v407_v31 = vld [vmem:[%s2216_s4 + $0x70] sm:$0xff] (!%p247_p2)  ;;  %v410_v32 = vld [vmem:[%s2216_s4 + $0x88] sm:$0xff] (!%p247_p2)  ;;  %v412_v33 = vld [vmem:[%s2216_s4 + $0x98] sm:$0xff] (!%p247_p2) }
   0xd   : > { %s2221_s25 = smov (!%p282_p3, %s1132_s25), 1  ;;  %1301 = vmatprep.subr.bf16.mxu0 %v1300_v10  ;;  %v1314_v34 = vpack.c.bf16 %v407_v31, %v405_v30  ;;  %v1316_v35 = vpack.c.bf16 %v412_v33, %v410_v32  ;;  %v409_v36 = vld [vmem:[%s2216_s4 + $0x80] sm:$0xff]  ;;  %v411_v37 = vld [vmem:[%s2216_s4 + $0x90] sm:$0xff]  ;;  %v414_v38 = vld [vmem:[%s2216_s4 + $0xa8] sm:$0xff] }
   0xe   : > { %s1137_s19 = sshll.u32 %s2221_s25, 3  ;;  %v416_v39 = vld [vmem:[%s2216_s4 + $0xb8] sm:$0xff]  ;;  %v1318_v40 = vpack.c.bf16 %v411_v37, %v409_v36  ;;  %v413_v41 = vld [vmem:[%s2216_s4 + $0xa0] sm:$0xff]  ;;  %v415_v43 = vld [vmem:[%s2216_s4 + $0xb0] sm:$0xff]  ;;  %s1276_s23 = sshll.u32 %s2221_s25, 4 }
   0xf   : > { %s285_s28 = scalar_lea.vmem %s2212_s0, %s1137_s19  ;;  %v1320_v42 = vpack.c.bf16 %v416_v39, %v414_v38  ;;  %v418_v44 = vld [vmem:[%s2216_s4 + $0xc8] sm:$0xff]  ;;  %v420_v45 = vld [vmem:[%s2216_s4 + $0xd8] sm:$0xff]  ;;  %v723_v48 = vld [vmem:[%s2217_s5] sm:$0xff]  ;;  %v1322_v51 = vpack.c.bf16 %v415_v43, %v413_v41  ;;  %s1753_s13 = scalar_lea.vmem %s2213_s1, %s1276_s23 }
  0x10   : > { %v298_v15 = vld [vmem:[%s285_s28] sm:$0xff]  ;;  %v724_v46 = vld [vmem:[%s2217_s5 + $0x8] sm:$0xff]  ;;  %v726_v47 = vld [vmem:[%s2217_s5 + $0x18] sm:$0xff]  ;;  %v1324_v56 = vpack.c.bf16 %v420_v45, %v418_v44  ;;  %s295_s16 = scalar_lea.vmem %s2219_s7, %s1276_s23 }
  0x11   : > { %1292 = vmatmul.mubr.msk.f32.vlgmr.msra.gmra.mrb[0].mxu0 %vm308_vm1, %v298_v15  ;;  %v1396_v49 = vpack.c.bf16 %v726_v47, %v724_v46  ;;  %v725_v50 = vld [vmem:[%s2217_s5 + $0x10] sm:$0xff]  ;;  %v417_v52 = vld [vmem:[%s2216_s4 + $0xc0] sm:$0xff]  ;;  %v728_v55 = vld [vmem:[%s2217_s5 + $0x28] sm:$0xff] }
  0x12   : > { %1303 = vmatpush1.bf16.msra.mxu0 %v1302_v16  ;;  %501 = vmatprep.mubr.f32.mxu0 %v1525_v6  ;;  %v419_v53 = vld [vmem:[%s2216_s4 + $0xd0] sm:$0xff]  ;;  %v1398_v54 = vpack.c.bf16 %v725_v50, %v723_v48  ;;  %v730_v57 = vld [vmem:[%s2217_s5 + $0x38] sm:$0xff]  ;;  %v727_v58 = vld [vmem:[%s2217_s5 + $0x20] sm:$0xff] }
  0x13   : > { %1305 = vmatprep.subr.bf16.mxu0 %v1304_v17  ;;  %1397 = vmatprep.subr.bf16.mxu1 %v1396_v49  ;;  %v729_v59 = vld [vmem:[%s2217_s5 + $0x30] sm:$0xff]  ;;  %v422_v60 = vld [vmem:[%s2216_s4 + $0xe8] sm:$0xff]  ;;  %v424_v61 = vld [vmem:[%s2216_s4 + $0xf8] sm:$0xff]  ;;  %v1400_v62 = vpack.c.bf16 %v730_v57, %v728_v55  ;;  %v1326_v2 = vpack.c.bf16 %v419_v53, %v417_v52 }
  0x14   : > { %1399 = vmatpush1.bf16.msra.mxu1 %v1398_v54  ;;  %v1402_v63 = vpack.c.bf16 %v729_v59, %v727_v58  ;;  %v732_v0 = vld [vmem:[%s2217_s5 + $0x48] sm:$0xff]  ;;  %v734_v1 = vld [vmem:[%s2217_s5 + $0x58] sm:$0xff]  ;;  %v731_v4 = vld [vmem:[%s2217_s5 + $0x40] sm:$0xff]  ;;  %v1328_v7 = vpack.c.bf16 %v424_v61, %v422_v60 }
  0x15   : > { %1401 = vmatprep.subr.bf16.mxu1 %v1400_v62  ;;  %v1404_v3 = vpack.c.bf16 %v734_v1, %v732_v0  ;;  %v733_v5 = vld [vmem:[%s2217_s5 + $0x50] sm:$0xff]  ;;  %v421_v8 = vld [vmem:[%s2216_s4 + $0xe0] sm:$0xff]  ;;  %v1146_v10 = vld [vmem:[%s2216_s4 + $0x108] sm:$0xff] }
  0x16   : > { %1307 = vmatpush1.bf16.msra.mxu0 %v1306_v22  ;;  %v423_v9 = vld [vmem:[%s2216_s4 + $0xf0] sm:$0xff]  ;;  %v1148_v11 = vld [vmem:[%s2216_s4 + $0x118] sm:$0xff]  ;;  %v1406_v12 = vpack.c.bf16 %v733_v5, %v731_v4  ;;  %v736_v13 = vld [vmem:[%s2217_s5 + $0x68] sm:$0xff] }
  0x17   : > { %1309 = vmatprep.subr.bf16.mxu0 %v1308_v23  ;;  %v738_v14 = vld [vmem:[%s2217_s5 + $0x78] sm:$0xff]  ;;  %v735_v16 = vld [vmem:[%s2217_s5 + $0x60] sm:$0xff]  ;;  %v737_v17 = vld [vmem:[%s2217_s5 + $0x70] sm:$0xff]  ;;  %v1330_v18 = vpack.c.bf16 %v423_v9, %v421_v8  ;;  %v1332_v19 = vpack.c.bf16 %v1148_v11, %v1146_v10 }
  0x18   : > { %1403 = vmatpush1.bf16.msra.mxu1 %v1402_v63  ;;  %v1408_v15 = vpack.c.bf16 %v738_v14, %v736_v13  ;;  %v1145_v20 = vld [vmem:[%s2216_s4 + $0x100] sm:$0xff]  ;;  %v1147_v21 = vld [vmem:[%s2216_s4 + $0x110] sm:$0xff]  ;;  %v1150_v22 = vld [vmem:[%s2216_s4 + $0x128] sm:$0xff]  ;;  %v1410_v24 = vpack.c.bf16 %v737_v17, %v735_v16 }
  0x19   : > { %1405 = vmatprep.subr.bf16.mxu1 %v1404_v3  ;;  %v1152_v23 = vld [vmem:[%s2216_s4 + $0x138] sm:$0xff]  ;;  %v392_v25 = vld [vmem:[%s1753_s13] sm:$0xff]  ;;  %v1334_v26 = vpack.c.bf16 %v1147_v21, %v1145_v20  ;;  %v1154_v30 = vld [vmem:[%s2216_s4 + $0x148] sm:$0xff] }
  0x1a   : > { %1311 = vmatpush1.bf16.msra.mxu0 %v1310_v28  ;;  %v1336_v27 = vpack.c.bf16 %v1152_v23, %v1150_v22  ;;  %v1149_v28 = vld [vmem:[%s2216_s4 + $0x120] sm:$0xff]  ;;  %v1156_v31 = vld [vmem:[%s2216_s4 + $0x158] sm:$0xff]  ;;  %v1158_v36 = vld [vmem:[%s2216_s4 + $0x168] sm:$0xff] }
  0x1b   : > { %1313 = vmatprep.subr.bf16.mxu0 %v1312_v29  ;;  %v1151_v29 = vld [vmem:[%s2216_s4 + $0x130] sm:$0xff]  ;;  %v1340_v33 = vpack.c.bf16 %v1156_v31, %v1154_v30  ;;  %v1160_v37 = vld [vmem:[%s2216_s4 + $0x178] sm:$0xff]  ;;  %v1161_v46 = vld [vmem:[%s2216_s4 + $0x180] sm:$0xff] }
  0x1c   : > { %1407 = vmatpush1.bf16.msra.mxu1 %v1406_v12  ;;  %v1338_v32 = vpack.c.bf16 %v1151_v29, %v1149_v28  ;;  %v1344_v39 = vpack.c.bf16 %v1160_v37, %v1158_v36  ;;  %v1159_v41 = vld [vmem:[%s2216_s4 + $0x170] sm:$0xff]  ;;  %v1164_v43 = vld [vmem:[%s2216_s4 + $0x198] sm:$0xff]  ;;  %v1166_v48 = vld [vmem:[%s2216_s4 + $0x1a8] sm:$0xff] }
  0x1d   : > { %1409 = vmatprep.subr.bf16.mxu1 %v1408_v15  ;;  %v1163_v47 = vld [vmem:[%s2216_s4 + $0x190] sm:$0xff]  ;;  %v1168_v49 = vld [vmem:[%s2216_s4 + $0x1b8] sm:$0xff]  ;;  %v1165_v52 = vld [vmem:[%s2216_s4 + $0x1a0] sm:$0xff] }
  0x1e   : > { %1315 = vmatpush1.bf16.msra.mxu0 %v1314_v34  ;;  %v1153_v34 = vld [vmem:[%s2216_s4 + $0x140] sm:$0xff]  ;;  %v1350_v50 = vpack.c.bf16 %v1163_v47, %v1161_v46  ;;  %v1167_v53 = vld [vmem:[%s2216_s4 + $0x1b0] sm:$0xff]  ;;  %v1170_v54 = vld [vmem:[%s2216_s4 + $0x1c8] sm:$0xff] }
  0x1f   : > { %1317 = vmatprep.subr.bf16.mxu0 %v1316_v35  ;;  %v1155_v35 = vld [vmem:[%s2216_s4 + $0x150] sm:$0xff]  ;;  %v1172_v55 = vld [vmem:[%s2216_s4 + $0x1d8] sm:$0xff]  ;;  %v1169_v58 = vld [vmem:[%s2216_s4 + $0x1c0] sm:$0xff] }
  0x20   : > { %1411 = vmatpush1.bf16.msra.mxu1 %v1410_v24  ;;  %v1342_v38 = vpack.c.bf16 %v1155_v35, %v1153_v34  ;;  %v1356_v57 = vpack.c.bf16 %v1172_v55, %v1170_v54  ;;  %v1171_v59 = vld [vmem:[%s2216_s4 + $0x1d0] sm:$0xff]  ;;  %v1174_v60 = vld [vmem:[%s2216_s4 + $0x1e8] sm:$0xff]  ;;  %v1176_v61 = vld [vmem:[%s2216_s4 + $0x1f8] sm:$0xff] }
  0x21   : > { %v1358_v62 = vpack.c.bf16 %v1171_v59, %v1169_v58  ;;  %v1360_v63 = vpack.c.bf16 %v1176_v61, %v1174_v60  ;;  %v1173_v0 = vld [vmem:[%s2216_s4 + $0x1e0] sm:$0xff]  ;;  %v1175_v1 = vld [vmem:[%s2216_s4 + $0x1f0] sm:$0xff]  ;;  %v1180_v3 = vld [vmem:[%s2216_s4 + $0x218] sm:$0xff] }
  0x22   : > { %1319 = vmatpush1.bf16.msra.mxu0 %v1318_v40  ;;  %v1157_v40 = vld [vmem:[%s2216_s4 + $0x160] sm:$0xff]  ;;  %v1362_v4 = vpack.c.bf16 %v1175_v1, %v1173_v0  ;;  %v1179_v8 = vld [vmem:[%s2216_s4 + $0x210] sm:$0xff]  ;;  %v1182_v9 = vld [vmem:[%s2216_s4 + $0x228] sm:$0xff] }
  0x23   : > { %1321 = vmatprep.subr.bf16.mxu0 %v1320_v42  ;;  %v1162_v42 = vld [vmem:[%s2216_s4 + $0x188] sm:$0xff]  ;;  %v1346_v44 = vpack.c.bf16 %v1159_v41, %v1157_v40  ;;  %v1184_v10 = vld [vmem:[%s2216_s4 + $0x238] sm:$0xff]  ;;  %v1181_v14 = vld [vmem:[%s2216_s4 + $0x220] sm:$0xff] }
  0x24   : > { %v1348_v45 = vpack.c.bf16 %v1164_v43, %v1162_v42  ;;  %v508_v11 = vld [vmem:[%s1753_s13 + $0x1] sm:$0xff]  ;;  %v1368_v13 = vpack.c.bf16 %v1184_v10, %v1182_v9  ;;  %v1183_v15 = vld [vmem:[%s2216_s4 + $0x230] sm:$0xff]  ;;  %v1188_v17 = vld [vmem:[%s2216_s4 + $0x258] sm:$0xff] }
  0x25   : > { %v1186_v16 = vld [vmem:[%s2216_s4 + $0x248] sm:$0xff]  ;;  %v1185_v20 = vld [vmem:[%s2216_s4 + $0x240] sm:$0xff]  ;;  %v1187_v21 = vld [vmem:[%s2216_s4 + $0x250] sm:$0xff] }
  0x26   : > { %1323 = vmatpush1.bf16.msra.mxu0 %v1322_v51  ;;  %v1352_v51 = vpack.c.bf16 %v1168_v49, %v1166_v48  ;;  %v1190_v22 = vld [vmem:[%s2216_s4 + $0x268] sm:$0xff]  ;;  %v1192_v23 = vld [vmem:[%s2216_s4 + $0x278] sm:$0xff]  ;;  %v1374_v24 = vpack.c.bf16 %v1187_v21, %v1185_v20  ;;  %v751_v10 = vld [vmem:[%s2217_s5 + $0xe0] sm:$0xff] }
  0x27   : > { %1325 = vmatprep.subr.bf16.mxu0 %v1324_v56  ;;  %v1354_v56 = vpack.c.bf16 %v1167_v53, %v1165_v52  ;;  %v1194_v28 = vld [vmem:[%s2216_s4 + $0x288] sm:$0xff]  ;;  %v1196_v29 = vld [vmem:[%s2216_s4 + $0x298] sm:$0xff] }
  0x28   : > { %v1380_v31 = vpack.c.bf16 %v1196_v29, %v1194_v28  ;;  %v740_v35 = vld [vmem:[%s2217_s5 + $0x88] sm:$0xff]  ;;  %v742_v36 = vld [vmem:[%s2217_s5 + $0x98] sm:$0xff]  ;;  %v1211_v28 = vld [vmem:[%s2217_s5 + $0x110] sm:$0xff] }
  0x29   : > { %v1412_v37 = vpack.c.bf16 %v742_v36, %v740_v35  ;;  %v1198_v41 = vld [vmem:[%s2216_s4 + $0x2a8] sm:$0xff]  ;;  %v1200_v42 = vld [vmem:[%s2216_s4 + $0x2b8] sm:$0xff] }
  0x2a   : > { %1327 = vmatpush1.bf16.msra.mxu0 %v1326_v2  ;;  %v1178_v2 = vld [vmem:[%s2216_s4 + $0x208] sm:$0xff]  ;;  %v1384_v43 = vpack.c.bf16 %v1200_v42, %v1198_v41  ;;  %v746_v48 = vld [vmem:[%s2217_s5 + $0xb8] sm:$0xff]  ;;  %v1219_v41 = vld [vmem:[%s2217_s5 + $0x150] sm:$0xff] }
  0x2b   : > { %1329 = vmatprep.subr.bf16.mxu0 %v1328_v7  ;;  %v1364_v5 = vpack.c.bf16 %v1180_v3, %v1178_v2  ;;  %v1177_v7 = vld [vmem:[%s2216_s4 + $0x200] sm:$0xff]  ;;  %1413 = vmatprep.subr.bf16.mxu1 %v1412_v37  ;;  %v744_v47 = vld [vmem:[%s2217_s5 + $0xa8] sm:$0xff]  ;;  %v1204_v54 = vld [vmem:[%s2216_s4 + $0x2d8] sm:$0xff] }
  0x2c   : > { %v1366_v12 = vpack.c.bf16 %v1179_v8, %v1177_v7  ;;  %v1416_v49 = vpack.c.bf16 %v746_v48, %v744_v47  ;;  %v1202_v53 = vld [vmem:[%s2216_s4 + $0x2c8] sm:$0xff]  ;;  %v750_v60 = vld [vmem:[%s2217_s5 + $0xd8] sm:$0xff]  ;;  %v1223_v47 = vld [vmem:[%s2217_s5 + $0x170] sm:$0xff] }
  0x2d   : > { %v1388_v55 = vpack.c.bf16 %v1204_v54, %v1202_v53  ;;  %v748_v59 = vld [vmem:[%s2217_s5 + $0xc8] sm:$0xff]  ;;  %v1208_v2 = vld [vmem:[%s2216_s4 + $0x2f8] sm:$0xff]  ;;  %v1227_v53 = vld [vmem:[%s2217_s5 + $0x190] sm:$0xff] }
  0x2e   : > { %1331 = vmatpush1.bf16.msra.mxu0 %v1330_v18  ;;  %v1370_v18 = vpack.c.bf16 %v1183_v15, %v1181_v14  ;;  %v1420_v61 = vpack.c.bf16 %v750_v60, %v748_v59  ;;  %v1206_v1 = vld [vmem:[%s2216_s4 + $0x2e8] sm:$0xff]  ;;  %v754_v9 = vld [vmem:[%s2217_s5 + $0xf8] sm:$0xff]  ;;  %v1231_v59 = vld [vmem:[%s2217_s5 + $0x1b0] sm:$0xff] }
  0x2f   : > { %1333 = vmatprep.subr.bf16.mxu0 %v1332_v19  ;;  %v1372_v19 = vpack.c.bf16 %v1188_v17, %v1186_v16  ;;  %v1392_v3 = vpack.c.bf16 %v1208_v2, %v1206_v1  ;;  %v752_v8 = vld [vmem:[%s2217_s5 + $0xe8] sm:$0xff]  ;;  %v1212_v16 = vld [vmem:[%s2217_s5 + $0x118] sm:$0xff]  ;;  %v1235_v1 = vld [vmem:[%s2217_s5 + $0x1d0] sm:$0xff] }
  0x30   : > { %v615_v15 = vld [vmem:[%s1753_s13 + $0x2] sm:$0xff]  ;;  %v1220_v37 = vld [vmem:[%s2217_s5 + $0x158] sm:$0xff] }
  0x31   : > { %502 = vmatmul.mubr.f32.vlgmr.msra.gmra.mrb[2].mxu0 %v392_v25  ;;  %v1376_v25 = vpack.c.bf16 %v1192_v23, %v1190_v22  ;;  %v1144_v22 = vld [vmem:[%s2215_s3 + $0x1] ss:$0 sm:$0xff]  ;;  %v1214_v29 = vld [vmem:[%s2217_s5 + $0x128] sm:$0xff] }
  0x32   : > { %1335 = vmatpush1.bf16.msra.mxu0 %v1334_v26  ;;  %606 = vmatprep.mubr.f32.mxu0 %v1525_v6  ;;  %v1189_v26 = vld [vmem:[%s2216_s4 + $0x260] sm:$0xff]  ;;  %v1218_v36 = vld [vmem:[%s2217_s5 + $0x148] sm:$0xff] }
  0x33   : > { %1337 = vmatprep.subr.bf16.mxu0 %v1336_v27  ;;  %v1191_v27 = vld [vmem:[%s2216_s4 + $0x270] sm:$0xff]  ;;  %v1222_v42 = vld [vmem:[%s2217_s5 + $0x168] sm:$0xff] }
  0x34   : > { %v1378_v30 = vpack.c.bf16 %v1191_v27, %v1189_v26  ;;  %v1209_v27 = vld [vmem:[%s2217_s5 + $0x100] sm:$0xff]  ;;  %v1226_v48 = vld [vmem:[%s2217_s5 + $0x188] sm:$0xff] }
  0x35   : > { %v1230_v54 = vld [vmem:[%s2217_s5 + $0x1a8] sm:$0xff] }
  0x36   : > { %1339 = vmatpush1.bf16.msra.mxu0 %v1338_v32  ;;  %v1193_v32 = vld [vmem:[%s2216_s4 + $0x280] sm:$0xff]  ;;  %v1234_v60 = vld [vmem:[%s2217_s5 + $0x1c8] sm:$0xff] }
  0x37   : > { %1341 = vmatprep.subr.bf16.mxu0 %v1340_v33  ;;  %v1195_v33 = vld [vmem:[%s2216_s4 + $0x290] sm:$0xff]  ;;  %v1238_v2 = vld [vmem:[%s2217_s5 + $0x1e8] sm:$0xff] }
  0x38   : > { %v1382_v34 = vpack.c.bf16 %v1195_v33, %v1193_v32  ;;  %v1213_v33 = vld [vmem:[%s2217_s5 + $0x120] sm:$0xff] }
  0x3a   : > { %1343 = vmatpush1.bf16.msra.mxu0 %v1342_v38  ;;  %v739_v38 = vld [vmem:[%s2217_s5 + $0x80] sm:$0xff] }
  0x3b   : > { %1345 = vmatprep.subr.bf16.mxu0 %v1344_v39  ;;  %v741_v39 = vld [vmem:[%s2217_s5 + $0x90] sm:$0xff] }
  0x3c   : > { %v1414_v40 = vpack.c.bf16 %v741_v39, %v739_v38  ;;  %v1436_v39 = vpack.c.bf16 %v1220_v37, %v1218_v36  ;;  %v1257_v36 = vld [vmem:[%s2217_s5 + $0x280] sm:$0xff]  ;;  %v1259_v37 = vld [vmem:[%s2217_s5 + $0x290] sm:$0xff] }
  0x3e   : > { %1347 = vmatpush1.bf16.msra.mxu0 %v1346_v44  ;;  %v1197_v44 = vld [vmem:[%s2216_s4 + $0x2a0] sm:$0xff]  ;;  %1415 = vmatpush1.bf16.msra.mxu1 %v1414_v40 }
  0x3f   : > { %1349 = vmatprep.subr.bf16.mxu0 %v1348_v45  ;;  %v1199_v45 = vld [vmem:[%s2216_s4 + $0x2b0] sm:$0xff]  ;;  %1417 = vmatprep.subr.bf16.mxu1 %v1416_v49  ;;  %v1217_v40 = vld [vmem:[%s2217_s5 + $0x140] sm:$0xff]  ;;  %v1228_v49 = vld [vmem:[%s2217_s5 + $0x198] sm:$0xff] }
  0x40   : > { %v1386_v46 = vpack.c.bf16 %v1199_v45, %v1197_v44  ;;  %v1438_v44 = vpack.c.bf16 %v1219_v41, %v1217_v40  ;;  %v1478_v40 = vpack.c.bf16 %v1259_v37, %v1257_v36 }
  0x42   : > { %1351 = vmatpush1.bf16.msra.mxu0 %v1350_v50  ;;  %v743_v50 = vld [vmem:[%s2217_s5 + $0xa0] sm:$0xff] }
  0x43   : > { %1353 = vmatprep.subr.bf16.mxu0 %v1352_v51  ;;  %v745_v51 = vld [vmem:[%s2217_s5 + $0xb0] sm:$0xff] }
  0x44   : > { %v1418_v52 = vpack.c.bf16 %v745_v51, %v743_v50  ;;  %v1444_v51 = vpack.c.bf16 %v1228_v49, %v1226_v48  ;;  %v1265_v48 = vld [vmem:[%s2217_s5 + $0x2c0] sm:$0xff]  ;;  %v1267_v49 = vld [vmem:[%s2217_s5 + $0x2d0] sm:$0xff] }
  0x46   : > { %1355 = vmatpush1.bf16.msra.mxu0 %v1354_v56  ;;  %v1201_v56 = vld [vmem:[%s2216_s4 + $0x2c0] sm:$0xff]  ;;  %1419 = vmatpush1.bf16.msra.mxu1 %v1418_v52 }
  0x47   : > { %1357 = vmatprep.subr.bf16.mxu0 %v1356_v57  ;;  %v1203_v57 = vld [vmem:[%s2216_s4 + $0x2d0] sm:$0xff]  ;;  %1421 = vmatprep.subr.bf16.mxu1 %v1420_v61  ;;  %v1225_v52 = vld [vmem:[%s2217_s5 + $0x180] sm:$0xff]  ;;  %v1236_v61 = vld [vmem:[%s2217_s5 + $0x1d8] sm:$0xff] }
  0x48   : > { %v1390_v58 = vpack.c.bf16 %v1203_v57, %v1201_v56  ;;  %v1446_v56 = vpack.c.bf16 %v1227_v53, %v1225_v52  ;;  %v1486_v52 = vpack.c.bf16 %v1267_v49, %v1265_v48 }
  0x4a   : > { %1359 = vmatpush1.bf16.msra.mxu0 %v1358_v62  ;;  %v747_v62 = vld [vmem:[%s2217_s5 + $0xc0] sm:$0xff] }
  0x4b   : > { %1361 = vmatprep.subr.bf16.mxu0 %v1360_v63  ;;  %v749_v63 = vld [vmem:[%s2217_s5 + $0xd0] sm:$0xff] }
  0x4c   : > { %v1422_v0 = vpack.c.bf16 %v749_v63, %v747_v62  ;;  %v1452_v63 = vpack.c.bf16 %v1236_v61, %v1234_v60  ;;  %v427_v60 = vlaneseq }
  0x4e   : > { %1363 = vmatpush1.bf16.msra.mxu0 %v1362_v4  ;;  %v1205_v4 = vld [vmem:[%s2216_s4 + $0x2e0] sm:$0xff]  ;;  %1423 = vmatpush1.bf16.msra.mxu1 %v1422_v0  ;;  %v428_v61 = vshrl.u32 %v427_v60, 7 }
  0x4f   : > { %1365 = vmatprep.subr.bf16.mxu0 %v1364_v5  ;;  %v1207_v5 = vld [vmem:[%s2216_s4 + $0x2f0] sm:$0xff]  ;;  %v1233_v0 = vld [vmem:[%s2217_s5 + $0x1c0] sm:$0xff] }
  0x50   : > { %v1394_v7 = vpack.c.bf16 %v1207_v5, %v1205_v4  ;;  %v1454_v4 = vpack.c.bf16 %v1235_v1, %v1233_v0  ;;  %v433_v0 = vsub.s32 1, %v428_v61 }
  0x51   : > { %607 = vmatmul.mubr.f32.vlgmr.msra.gmra.mrb[2].mxu0 %v508_v11  ;;  %v1424_v11 = vpack.c.bf16 %v754_v9, %v752_v8  ;;  %v1239_v8 = vld [vmem:[%s2217_s5 + $0x1f0] sm:$0xff]  ;;  %v1242_v9 = vld [vmem:[%s2217_s5 + $0x208] sm:$0xff] }
  0x52   : > { %1367 = vmatpush1.bf16.msra.mxu0 %v1366_v12  ;;  %713 = vmatprep.mubr.f32.mxu0 %v1525_v6  ;;  %v753_v12 = vld [vmem:[%s2217_s5 + $0xf0] sm:$0xff] }
  0x53   : > { %1369 = vmatprep.subr.bf16.mxu0 %v1368_v13  ;;  %v1210_v13 = vld [vmem:[%s2217_s5 + $0x108] sm:$0xff]  ;;  %v1426_v14 = vpack.c.bf16 %v753_v12, %v751_v10  ;;  %1425 = vmatprep.subr.bf16.mxu1 %v1424_v11  ;;  %v1244_v10 = vld [vmem:[%s2217_s5 + $0x218] sm:$0xff] }
  0x54   : > { %v1428_v17 = vpack.c.bf16 %v1212_v16, %v1210_v13  ;;  %v1460_v12 = vpack.c.bf16 %v1244_v10, %v1242_v9  ;;  %v1241_v13 = vld [vmem:[%s2217_s5 + $0x200] sm:$0xff]  ;;  %v1248_v16 = vld [vmem:[%s2217_s5 + $0x238] sm:$0xff] }
  0x55   : > { %1427 = vmatpush1.bf16.msra.mxu1 %v1426_v14  ;;  %v1243_v14 = vld [vmem:[%s2217_s5 + $0x210] sm:$0xff] }
  0x56   : > { %1371 = vmatpush1.bf16.msra.mxu0 %v1370_v18  ;;  %1429 = vmatprep.subr.bf16.mxu1 %v1428_v17  ;;  %v1142_v18 = vld [vmem:[%s2215_s3] ss:$0 sm:$0xff]  ;;  %v1462_v17 = vpack.c.bf16 %v1243_v14, %v1241_v13 }
  0x57   : > { %1373 = vmatprep.subr.bf16.mxu0 %v1372_v19 }
  0x5a   : > { %1375 = vmatpush1.bf16.msra.mxu0 %v1374_v24 }
  0x5b   : > { %1377 = vmatprep.subr.bf16.mxu0 %v1376_v25 }
  0x5e   : > { %1379 = vmatpush1.bf16.msra.mxu0 %v1378_v30  ;;  %v1216_v30 = vld [vmem:[%s2217_s5 + $0x138] sm:$0xff] }
  0x5f   : > { %1381 = vmatprep.subr.bf16.mxu0 %v1380_v31  ;;  %v1430_v31 = vpack.c.bf16 %v1211_v28, %v1209_v27  ;;  %v1432_v32 = vpack.c.bf16 %v1216_v30, %v1214_v29  ;;  %v1251_v27 = vld [vmem:[%s2217_s5 + $0x250] sm:$0xff]  ;;  %v1254_v28 = vld [vmem:[%s2217_s5 + $0x268] sm:$0xff]  ;;  %v1253_v30 = vld [vmem:[%s2217_s5 + $0x260] sm:$0xff] }
  0x62   : > { %1383 = vmatpush1.bf16.msra.mxu0 %v1382_v34  ;;  %v1215_v34 = vld [vmem:[%s2217_s5 + $0x130] sm:$0xff] }
  0x63   : > { %1385 = vmatprep.subr.bf16.mxu0 %v1384_v43  ;;  %v1434_v38 = vpack.c.bf16 %v1215_v34, %v1213_v33  ;;  %v1224_v43 = vld [vmem:[%s2217_s5 + $0x178] sm:$0xff] }
  0x64   : > { %v1440_v45 = vpack.c.bf16 %v1224_v43, %v1222_v42  ;;  %v1260_v33 = vld [vmem:[%s2217_s5 + $0x298] sm:$0xff]  ;;  %v1261_v42 = vld [vmem:[%s2217_s5 + $0x2a0] sm:$0xff]  ;;  %v1263_v43 = vld [vmem:[%s2217_s5 + $0x2b0] sm:$0xff] }
  0x66   : > { %1387 = vmatpush1.bf16.msra.mxu0 %v1386_v46  ;;  %v1221_v46 = vld [vmem:[%s2217_s5 + $0x160] sm:$0xff] }
  0x67   : > { %1389 = vmatprep.subr.bf16.mxu0 %v1388_v55  ;;  %v1442_v50 = vpack.c.bf16 %v1223_v47, %v1221_v46  ;;  %v1232_v55 = vld [vmem:[%s2217_s5 + $0x1b8] sm:$0xff]  ;;  %v1482_v46 = vpack.c.bf16 %v1263_v43, %v1261_v42 }
  0x68   : > { %v1448_v57 = vpack.c.bf16 %v1232_v55, %v1230_v54  ;;  %v1269_v54 = vld [vmem:[%s2217_s5 + $0x2e0] sm:$0xff]  ;;  %v1271_v55 = vld [vmem:[%s2217_s5 + $0x2f0] sm:$0xff] }
  0x6a   : > { %1391 = vmatpush1.bf16.msra.mxu0 %v1390_v58  ;;  %v1229_v58 = vld [vmem:[%s2217_s5 + $0x1a0] sm:$0xff] }
  0x6b   : > { %1393 = vmatprep.subr.bf16.mxu0 %v1392_v3  ;;  %v1450_v62 = vpack.c.bf16 %v1231_v59, %v1229_v58  ;;  %v1240_v3 = vld [vmem:[%s2217_s5 + $0x1f8] sm:$0xff] }
  0x6c   : > { %v1456_v5 = vpack.c.bf16 %v1240_v3, %v1238_v2  ;;  %v1273_v3 = vld [vmem:[%s2218_s6 + $0x1] ss:$2 sm:$0x3] }
  0x6e   : > { %1395 = vmatpush1.bf16.msra.mxu0 %v1394_v7  ;;  %v1237_v7 = vld [vmem:[%s2217_s5 + $0x1e0] sm:$0xff] }
  0x6f   : > { %v1458_v11 = vpack.c.bf16 %v1239_v8, %v1237_v7 }
  0x71   : > { %714 = vmatmul.mubr.f32.vlgmr.msra.gmra.mrb[2].mxu0 %v615_v15  ;;  %v1246_v15 = vld [vmem:[%s2217_s5 + $0x228] sm:$0xff] }
  0xe4   : > { %v378_v19 = vpop.f32.mrb[0].mxu0 }
  0xe5   : > { %v379_v20 = vadd.f32 %v1142_v18, %v378_v19  ;;  %v1293_v21 = vpop.f32.mrb[1].mxu0  ;;  %v1464_v18 = vpack.c.bf16 %v1248_v16, %v1246_v15  ;;  %v1245_v19 = vld [vmem:[%s2217_s5 + $0x220] sm:$0xff] }
  0xe6   : > { %v1250_v21 = vld [vmem:[%s2217_s5 + $0x248] sm:$0xff] }
  0xe7   : > { %v384_v23 = vmin.f32 %v379_v20, 0.0  ;;  %v382_v24 = vmax.f32 %v379_v20, 0.0  ;;  %v1247_v20 = vld [vmem:[%s2217_s5 + $0x230] sm:$0xff] }
  0xe9   : > { %v389_v25 = vmul.f32 %v1144_v22, %v384_v23  ;;  %v1252_v22 = vld [vmem:[%s2217_s5 + $0x258] sm:$0xff]  ;;  %v1466_v23 = vpack.c.bf16 %v1247_v20, %v1245_v19 }
  0xeb   : > { %v2006_v26 = vadd.f32 %v389_v25, %v382_v24  ;;  %v1468_v24 = vpack.c.bf16 %v1252_v22, %v1250_v21  ;;  %v1249_v25 = vld [vmem:[%s2217_s5 + $0x240] sm:$0xff] }
  0xed   : > { %391 = vst [vmem:[#allocation2 + $0x1] sm:$0xff] %v2006_v26 }
  0xf4   : > { %v722_v35 = vld [vmem:[#allocation2] sm:$0xff] }
  0xf5   : > { %820 = vmatmul.mubr.f32.vlgmr.msra.gmra.mrb[0].mxu1 %v722_v35 }
  0xf6   : > { %1431 = vmatpush1.bf16.msra.mxu1 %v1430_v31  ;;  %926 = vmatprep.mubr.f32.mxu1 %v1525_v6  ;;  %v1255_v31 = vld [vmem:[%s2217_s5 + $0x270] sm:$0xff] }
  0xf7   : > { %1433 = vmatprep.subr.bf16.mxu1 %v1432_v32  ;;  %v1258_v32 = vld [vmem:[%s2217_s5 + $0x288] sm:$0xff]  ;;  %v1474_v34 = vpack.c.bf16 %v1255_v31, %v1253_v30 }
  0xf8   : > { %v1476_v35 = vpack.c.bf16 %v1260_v33, %v1258_v32 }
  0xfa   : > { %1435 = vmatpush1.bf16.msra.mxu1 %v1434_v38  ;;  %v1262_v38 = vld [vmem:[%s2217_s5 + $0x2a8] sm:$0xff] }
  0xfb   : > { %1437 = vmatprep.subr.bf16.mxu1 %v1436_v39  ;;  %v1264_v39 = vld [vmem:[%s2217_s5 + $0x2b8] sm:$0xff] }
  0xfc   : > { %v1480_v41 = vpack.c.bf16 %v1264_v39, %v1262_v38 }
  0xfe   : > { %1439 = vmatpush1.bf16.msra.mxu1 %v1438_v44  ;;  %v1266_v44 = vld [vmem:[%s2217_s5 + $0x2c8] sm:$0xff] }
  0xff   : > { %1441 = vmatprep.subr.bf16.mxu1 %v1440_v45  ;;  %v1268_v45 = vld [vmem:[%s2217_s5 + $0x2d8] sm:$0xff] }
 0x100   : > { %v1484_v47 = vpack.c.bf16 %v1268_v45, %v1266_v44 }
 0x102   : > { %1443 = vmatpush1.bf16.msra.mxu1 %v1442_v50  ;;  %v1270_v50 = vld [vmem:[%s2217_s5 + $0x2e8] sm:$0xff] }
 0x103   : > { %1445 = vmatprep.subr.bf16.mxu1 %v1444_v51  ;;  %v1272_v51 = vld [vmem:[%s2217_s5 + $0x2f8] sm:$0xff] }
 0x104   : > { %v1488_v53 = vpack.c.bf16 %v1272_v51, %v1270_v50 }
 0x106   : > { %1447 = vmatpush1.bf16.msra.mxu1 %v1446_v56  ;;  %v1490_v56 = vpack.c.bf16 %v1271_v55, %v1269_v54 }
 0x107   : > { %1449 = vmatprep.subr.bf16.mxu1 %v1448_v57  ;;  %v935_v57 = vld [vmem:[#allocation2 + $0x2] sm:$0xff] }
 0x10a   : > { %1451 = vmatpush1.bf16.msra.mxu1 %v1450_v62  ;;  %v429_v62 = vsub.s32 0, %v428_v61 }
 0x10b   : > { %1453 = vmatprep.subr.bf16.mxu1 %v1452_v63  ;;  %v425_v63 = vld [vmem:[%s2218_s6] ss:$2 sm:$0x3] }
 0x10c   : > { %v430_v1 = vrot.slane %v425_v63, %v429_v62  ;;  %v434_v2 = vrot.slane %v425_v63, %v433_v0  ;;  %v1052_v9 = vrot.slane %v1273_v3, %v429_v62 }
 0x10e   : > { %1455 = vmatpush1.bf16.msra.mxu1 %v1454_v4 }
 0x10f   : > { %1457 = vmatprep.subr.bf16.mxu1 %v1456_v5 }
 0x112   : > { %1459 = vmatpush1.bf16.msra.mxu1 %v1458_v11 }
 0x113   : > { %1461 = vmatprep.subr.bf16.mxu1 %v1460_v12  ;;  %v1056_v12 = vrot.slane %v1273_v3, %v433_v0 }
 0x115   : > { %927 = vmatmul.mubr.f32.vlgmr.msra.gmra.mrb[0].mxu1 %v2006_v26  ;;  %v1256_v26 = vld [vmem:[%s2217_s5 + $0x278] sm:$0xff] }
 0x116   : > { %1463 = vmatpush1.bf16.msra.mxu1 %v1462_v17  ;;  %1033 = vmatprep.mubr.f32.mxu1 %v1525_v6  ;;  %v1470_v6 = vpack.c.bf16 %v1251_v27, %v1249_v25  ;;  %v1472_v29 = vpack.c.bf16 %v1256_v26, %v1254_v28 }
 0x117   : > { %1465 = vmatprep.subr.bf16.mxu1 %v1464_v18 }
 0x11a   : > { %1467 = vmatpush1.bf16.msra.mxu1 %v1466_v23 }
 0x11b   : > { %1469 = vmatprep.subr.bf16.mxu1 %v1468_v24 }
 0x11e   : > { %1471 = vmatpush1.bf16.msra.mxu1 %v1470_v6 }
 0x11f   : > { %1473 = vmatprep.subr.bf16.mxu1 %v1472_v29 }
 0x122   : > { %1475 = vmatpush1.bf16.msra.mxu1 %v1474_v34 }
 0x123   : > { %1477 = vmatprep.subr.bf16.mxu1 %v1476_v35 }
 0x126   : > { %1479 = vmatpush1.bf16.msra.mxu1 %v1478_v40 }
 0x127   : > { %1481 = vmatprep.subr.bf16.mxu1 %v1480_v41 }
 0x12a   : > { %1483 = vmatpush1.bf16.msra.mxu1 %v1482_v46 }
 0x12b   : > { %1485 = vmatprep.subr.bf16.mxu1 %v1484_v47 }
 0x12e   : > { %1487 = vmatpush1.bf16.msra.mxu1 %v1486_v52 }
 0x12f   : > { %1489 = vmatprep.subr.bf16.mxu1 %v1488_v53 }
 0x132   : > { %1491 = vmatpush1.bf16.msra.mxu1 %v1490_v56 }
 0x135   : > { %1034 = vmatmul.mubr.f32.vlgmr.msra.gmra.mrb[0].mxu1 %v935_v57 }
 0x144   : > { %v715_v58 = vpop.f32.mrb[2].mxu0 }
 0x145   : > { %v717_v59 = vpop.f32.mrb[3].mxu0  ;;  %v1492_v4 = vadd.f32 %v715_v58, %v430_v1 }
 0x146   : > { %v1494_v5 = vadd.f32 %v717_v59, %v434_v2 }
 0x208   : > { %v1035_v7 = vpop.f32.mrb[0].mxu1 }
 0x209   : > { %v1493_v8 = vadd.f32 %v1492_v4, %v1035_v7  ;;  %v1037_v10 = vpop.f32.mrb[1].mxu1 }
 0x20a   : > { %v1495_v11 = vadd.f32 %v1494_v5, %v1037_v10 }
 0x20b   : > { %v1046_v13 = vmin.f32 %v1493_v8, 0.0  ;;  %v1042_v15 = vmax.f32 %v1493_v8, 0.0 }
 0x20c   : > { %v1047_v14 = vmin.f32 %v1495_v11, 0.0  ;;  %v1043_v17 = vmax.f32 %v1495_v11, 0.0 }
 0x20d   : > { %v1059_v16 = vmul.f32 %v1052_v9, %v1046_v13 }
 0x20e   : > { %v1060_v18 = vmul.f32 %v1056_v12, %v1047_v14 }
 0x20f   : > { %v1061_v19 = vadd.f32 %v1059_v16, %v1042_v15 }
 0x210   : > { %v1062_v20 = vadd.f32 %v1060_v18, %v1043_v17 }
 0x211   : > { %1063 = vst [vmem:[%s295_s16] sm:$0xff] %v1061_v19 }
 0x212   : > { %1064 = vst [vmem:[%s295_s16 + $0x8] sm:$0xff] %v1062_v20 }
 0x213 PF: > { %s17_s24 = sadd.s32 1, %s1521_s24  }
 0x214   : > { %p14_p4 = scmp.ge.s32.totalorder %s17_s24, 4  }
 0x216   :  { %16 = sbr.rel (!%p14_p4) target bundleno = 1 (0x1), region = 86 }

</bundles_post_ra>
